<compile_context>
chip_gen: v7x
topology: tpu7x:2x2x1
jax: 0.10.0
libtpu: 0.0.40
codegen_flags: <defaults>
</compile_context>

<pallas_src>
import functools

import jax
import jax.numpy as jnp
from jax.experimental import pallas as pl
from jax.experimental.pallas import tpu as pltpu


# --------------------------- hardware-aware config -------------------------- #

@functools.lru_cache(maxsize=None)
def _vmem_limit_bytes():
    cap = 128 * 1024 * 1024
    try:
        cap = int(pltpu.get_tpu_info().vmem_capacity_bytes)
    except Exception:
        pass
    # 48 MiB on 128-MiB-VMEM chips (v5e/v6e), 32 MiB on v7x (64 MiB physical).
    return min(cap // 2, 48 * 1024 * 1024)


@functools.lru_cache(maxsize=None)
def _tpu_generation():
    try:
        kind = jax.devices()[0].device_kind.lower()
    except Exception:
        return 6
    for g in (7, 6, 5, 4):
        if f"v{g}" in kind:
            return g
    return 6


def _default_tiles():
    if _tpu_generation() >= 6:     # 256-wide MXU: bigger N/K tiles
        return {"s": 128, "n": 512, "i": 512, "q": 128, "k": 256}
    return {"s": 128, "n": 256, "i": 256, "q": 128, "k": 128}   # v5e: 128-wide MXU


def _pick_tile(dim, preferred, quantum=128):
    """Largest tile <= preferred that divides `dim` and is a multiple of
    `quantum`; falls back to the full dim (always a legal block shape)."""
    if dim <= preferred:
        return dim
    t = (preferred // quantum) * quantum
    while t >= quantum:
        if dim % t == 0:
            return t
        t -= quantum
    return dim


# --------------------- kernel 1: RMSNorm + (QKV) matmul --------------------- #

def _rmsnorm_matmul_kernel(x_ref, nw_ref, w_ref, o_ref, xn_sc, *, eps):
    # Normalized activation is computed once per (b, seq-tile) and cached.
    @pl.when(pl.program_id(2) == 0)
    def _():
        x = x_ref[0].astype(jnp.float32)                   # [tS, D]
        var = jnp.mean(x * x, axis=-1, keepdims=True)
        xn_sc[...] = (x * jax.lax.rsqrt(var + eps)
                      * nw_ref[...].astype(jnp.float32)).astype(xn_sc.dtype)

    o_ref[0] = jnp.dot(xn_sc[...], w_ref[...],
                       preferred_element_type=jnp.float32).astype(o_ref.dtype)


def rmsnorm_matmul(x, norm_w, w, *, eps, tile_s, tile_n):
    B, S, D = x.shape
    N = w.shape[1]
    ts, tn = tile_s, tile_n
    return pl.pallas_call(
        functools.partial(_rmsnorm_matmul_kernel, eps=eps),
        grid=(B, S // ts, N // tn),
        in_specs=[
            pl.BlockSpec((1, ts, D), lambda b, s, n: (b, s, 0)),
            pl.BlockSpec((1, D), lambda b, s, n: (0, 0)),
            pl.BlockSpec((D, tn), lambda b, s, n: (0, n)),
        ],
        out_specs=pl.BlockSpec((1, ts, tn), lambda b, s, n: (b, s, n)),
        out_shape=jax.ShapeDtypeStruct((B, S, N), x.dtype),
        scratch_shapes=[pltpu.VMEM((ts, D), w.dtype)],
        compiler_params=pltpu.CompilerParams(
            dimension_semantics=("parallel", "parallel", "arbitrary"),
            vmem_limit_bytes=_vmem_limit_bytes()),
    )(x, norm_w, w)


# ------------- kernel 2: RoPE + head split (q/k/v -> [B,H,S,Hd]) ------------ #

def _rope_split_kernel(q_ref, k_ref, v_ref, cos_ref, sin_ref,
                       qo_ref, ko_ref, vo_ref):
    hd = q_ref.shape[-1]
    half = hd // 2
    # rotate_half(x) = roll(x, hd/2, lane-axis) * [-1]*half ++ [+1]*half
    sign = jnp.where(
        jax.lax.broadcasted_iota(jnp.int32, (1, hd), 1) < half, -1.0, 1.0)
    cos = cos_ref[...].astype(jnp.float32)
    sin = sin_ref[...].astype(jnp.float32)

    def rope(x):
        xf = x.astype(jnp.float32)
        return xf * cos + pltpu.roll(xf, half, axis=1) * sign * sin

    qo_ref[0, 0] = rope(q_ref[0]).astype(qo_ref.dtype)
    ko_ref[0, 0] = rope(k_ref[0]).astype(ko_ref.dtype)
    vo_ref[0, 0] = v_ref[0]


def rope_split_heads(qkv, cos, sin, *, num_heads, head_dim, tile_s):
    B, S, _ = qkv.shape
    H, Hd, ts = num_heads, head_dim, tile_s
    out_sd = jax.ShapeDtypeStruct((B, H, S, Hd), qkv.dtype)
    return pl.pallas_call(
        _rope_split_kernel,
        grid=(B, H, S // ts),
        in_specs=[
            # per-head column views into the fused [B, S, 3D] tensor
            pl.BlockSpec((1, ts, Hd), lambda b, h, s: (b, s, h)),
            pl.BlockSpec((1, ts, Hd), lambda b, h, s, H=H: (b, s, H + h)),
            pl.BlockSpec((1, ts, Hd), lambda b, h, s, H=H: (b, s, 2 * H + h)),
            pl.BlockSpec((ts, Hd), lambda b, h, s: (s, 0)),
            pl.BlockSpec((ts, Hd), lambda b, h, s: (s, 0)),
        ],
        out_specs=(
            pl.BlockSpec((1, 1, ts, Hd), lambda b, h, s: (b, h, s, 0)),
            pl.BlockSpec((1, 1, ts, Hd), lambda b, h, s: (b, h, s, 0)),
            pl.BlockSpec((1, 1, ts, Hd), lambda b, h, s: (b, h, s, 0)),
        ),
        out_shape=(out_sd, out_sd, out_sd),
        compiler_params=pltpu.CompilerParams(
            dimension_semantics=("parallel", "parallel", "parallel"),
            vmem_limit_bytes=_vmem_limit_bytes()),
    )(qkv, qkv, qkv, cos, sin)


# ------- kernel 3: flash attention + out-proj + residual (tile skipping) ---- #

def _flash_attn_kernel(flags_ref,                       # SMEM [nq, nk] int32
                       q_ref, k_ref, v_ref, mask_ref, wo_ref, res_ref,
                       o_ref, m_sc, l_sc, acc_sc, *, sm_scale, num_heads):
    qi = pl.program_id(1)
    ki = pl.program_id(2)

    @pl.when(ki == 0)
    def _():
        # finite floor (not -inf) keeps the online softmax NaN-free even if a
        # caller supplies -inf masks or a fully-masked kv tile comes first.
        m_sc[...] = jnp.full_like(m_sc, -1e30)
        l_sc[...] = jnp.zeros_like(l_sc)
        acc_sc[...] = jnp.zeros_like(acc_sc)

    @pl.when(flags_ref[qi, ki] != 0)                    # skip fully-masked tiles
    def _():
        q = q_ref[0]                                    # [H, tq, hd] (RoPE'd)
        k = k_ref[0]                                    # [H, tk, hd] (RoPE'd)
        v = v_ref[0]                                    # [H, tk, hd]
        s = jnp.einsum("hqd,hkd->hqk", q, k,
                       preferred_element_type=jnp.float32) * sm_scale
        s = s + mask_ref[0, 0].astype(jnp.float32)[None]

        m_prev = m_sc[...]                              # [H, tq, 1]
        m_new = jnp.maximum(m_prev, jnp.max(s, axis=-1, keepdims=True))
        alpha = jnp.exp(m_prev - m_new)
        p = jnp.exp(s - m_new)
        l_sc[...] = alpha * l_sc[...] + jnp.sum(p, axis=-1, keepdims=True)
        acc_sc[...] = alpha * acc_sc[...] + jnp.einsum(
            "hqk,hkd->hqd", p.astype(v.dtype), v,
            preferred_element_type=jnp.float32)
        m_sc[...] = m_new

    @pl.when(ki == pl.num_programs(2) - 1)
    def _():
        inv_l = pl.reciprocal(jnp.maximum(l_sc[...], jnp.float32(1e-30)),
                              approx=True)
        out_h = acc_sc[...] * inv_l                     # [H, tq, hd]
        # Single K=D out-projection matmul (heads concatenated along lanes)
        out_cat = jnp.concatenate(
            [out_h[h] for h in range(num_heads)], axis=-1)   # [tq, D]
        proj = jnp.dot(out_cat.astype(wo_ref.dtype), wo_ref[...],
                       preferred_element_type=jnp.float32)
        o_ref[0] = (res_ref[0].astype(jnp.float32) + proj).astype(o_ref.dtype)


def flash_attention(q, k, v, mask, tile_flags, wo, residual, *,
                    sm_scale, tile_q, tile_k):
    B, H, S, Hd = q.shape
    D = wo.shape[0]
    tq, tk = tile_q, tile_k
    kern = functools.partial(_flash_attn_kernel, sm_scale=sm_scale, num_heads=H)
    grid_spec = pltpu.PrefetchScalarGridSpec(
        num_scalar_prefetch=1,
        grid=(B, S // tq, S // tk),
        in_specs=[
            pl.BlockSpec((1, H, tq, Hd), lambda b, qi, ki, f: (b, 0, qi, 0)),
            pl.BlockSpec((1, H, tk, Hd), lambda b, qi, ki, f: (b, 0, ki, 0)),
            pl.BlockSpec((1, H, tk, Hd), lambda b, qi, ki, f: (b, 0, ki, 0)),
            pl.BlockSpec((1, 1, tq, tk), lambda b, qi, ki, f: (0, 0, qi, ki)),
            # grid-invariant Wo: single-buffered, never re-fetched
            pl.BlockSpec((D, D), lambda b, qi, ki, f: (0, 0),
                         pipeline_mode=pl.Buffered(1)),
            pl.BlockSpec((1, tq, D), lambda b, qi, ki, f: (b, qi, 0)),
        ],
        out_specs=pl.BlockSpec((1, tq, D), lambda b, qi, ki, f: (b, qi, 0)),
        scratch_shapes=[
            pltpu.VMEM((H, tq, 1), jnp.float32),    # running max
            pltpu.VMEM((H, tq, 1), jnp.float32),    # running denom
            pltpu.VMEM((H, tq, Hd), jnp.float32),   # output accumulator
        ],
    )
    return pl.pallas_call(
        kern,
        grid_spec=grid_spec,
        out_shape=jax.ShapeDtypeStruct((B, S, D), residual.dtype),
        compiler_params=pltpu.CompilerParams(
            dimension_semantics=("parallel", "parallel", "arbitrary"),
            vmem_limit_bytes=_vmem_limit_bytes()),
    )(tile_flags, q, k, v, mask, wo, residual)


# ----------- kernel 4: RMSNorm + gated SiLU MLP + residual (tiled I) -------- #

def _mlp_kernel(h_ref, nw_ref, wg_ref, wu_ref, wd_ref, o_ref,
                xn_sc, acc_ref, *, eps):
    i = pl.program_id(2)

    @pl.when(i == 0)
    def _():
        x = h_ref[0].astype(jnp.float32)                   # [tS, D]
        var = jnp.mean(x * x, axis=-1, keepdims=True)
        xn_sc[...] = (x * jax.lax.rsqrt(var + eps)
                      * nw_ref[...].astype(jnp.float32)).astype(xn_sc.dtype)
        acc_ref[...] = x                                   # start from residual

    xn = xn_sc[...]
    g = jnp.dot(xn, wg_ref[...], preferred_element_type=jnp.float32)
    u = jnp.dot(xn, wu_ref[...], preferred_element_type=jnp.float32)
    act = (g * jax.nn.sigmoid(g)) * u                      # SiLU gate * up
    acc_ref[...] += jnp.dot(act.astype(wd_ref.dtype), wd_ref[...],
                            preferred_element_type=jnp.float32)

    @pl.when(i == pl.num_programs(2) - 1)
    def _():
        o_ref[0] = acc_ref[...].astype(o_ref.dtype)


def mlp_block(h, norm_w, wg, wu, wd, *, eps, tile_s, tile_i):
    B, S, D = h.shape
    I = wg.shape[1]
    ts, ti = tile_s, tile_i
    return pl.pallas_call(
        functools.partial(_mlp_kernel, eps=eps),
        grid=(B, S // ts, I // ti),
        in_specs=[
            pl.BlockSpec((1, ts, D), lambda b, s, i: (b, s, 0)),
            pl.BlockSpec((1, D), lambda b, s, i: (0, 0)),
            pl.BlockSpec((D, ti), lambda b, s, i: (0, i)),
            pl.BlockSpec((D, ti), lambda b, s, i: (0, i)),
            pl.BlockSpec((ti, D), lambda b, s, i: (i, 0)),
        ],
        out_specs=pl.BlockSpec((1, ts, D), lambda b, s, i: (b, s, 0)),
        out_shape=jax.ShapeDtypeStruct((B, S, D), h.dtype),
        scratch_shapes=[pltpu.VMEM((ts, D), wg.dtype),
                        pltpu.VMEM((ts, D), jnp.float32)],
        compiler_params=pltpu.CompilerParams(
            dimension_semantics=("parallel", "parallel", "arbitrary"),
            vmem_limit_bytes=_vmem_limit_bytes()),
    )(h, norm_w, wg, wu, wd)


# ------------------------------ layer / model ------------------------------- #

def pixtral_layer(h, mask_b, tile_flags, cos, sin, lp, *, num_heads, head_dim,
                  eps, tiles, tile_q, tile_k):
    B, S, D = h.shape
    ts = _pick_tile(S, tiles["s"], 8)
    tn = _pick_tile(3 * D, tiles["n"], 128)
    ti = _pick_tile(lp["w_gate"].shape[1], tiles["i"], 128)

    # RMSNorm + fused QKV projection (tiled over the 3D output dim)
    qkv = rmsnorm_matmul(h, lp["attn_norm"], lp["wqkv"],
                         eps=eps, tile_s=ts, tile_n=tn)            # [B, S, 3D]

    # RoPE + head split once per layer (no XLA split / transpose)
    q, k, v = rope_split_heads(qkv, cos, sin, num_heads=num_heads,
                               head_dim=head_dim, tile_s=ts)       # [B,H,S,Hd]

    # flash attention (+ out-proj + residual), masked kv tiles skipped
    h1 = flash_attention(q, k, v, mask_b, tile_flags, lp["wo"], h,
                         sm_scale=head_dim ** -0.5,
                         tile_q=tile_q, tile_k=tile_k)             # [B, S, D]

    # RMSNorm + gated MLP (+ residual), tiled over the intermediate dim
    return mlp_block(h1, lp["ffn_norm"], lp["w_gate"], lp["w_up"], lp["w_down"],
                     eps=eps, tile_s=ts, tile_i=ti)


class PixtralVisionModelPallas:
    """Equivalent of `_PixtralVisionModel` (wrapping PixtralTransformer)."""

    def __init__(self, key, *, num_layers, hidden, num_heads, intermediate,
                 eps=1e-5, output_hidden_states=False, dtype=jnp.bfloat16):
        assert hidden % num_heads == 0
        self.num_heads = num_heads
        self.head_dim = hidden // num_heads
        self.eps = eps
        self.output_hidden_states = output_hidden_states
        self.dtype = dtype
        self.tiles = _default_tiles()

        self.layers = []
        scale = 0.02
        for _ in range(num_layers):
            key, *ks = jax.random.split(key, 6)
            self.layers.append({
                "attn_norm": jnp.ones((1, hidden), jnp.float32),
                "wqkv": (scale * jax.random.normal(
                    ks[0], (hidden, 3 * hidden), jnp.float32)).astype(dtype),
                "wo": (scale * jax.random.normal(
                    ks[1], (hidden, hidden), jnp.float32)).astype(dtype),
                "ffn_norm": jnp.ones((1, hidden), jnp.float32),
                "w_gate": (scale * jax.random.normal(
                    ks[2], (hidden, intermediate), jnp.float32)).astype(dtype),
                "w_up": (scale * jax.random.normal(
                    ks[3], (hidden, intermediate), jnp.float32)).astype(dtype),
                "w_down": (scale * jax.random.normal(
                    ks[4], (intermediate, hidden), jnp.float32)).astype(dtype),
            })

    def __call__(self, patch_embeds, attention_mask,
                 position_embeddings_1, position_embeddings_2):
        h = patch_embeds.astype(self.dtype)
        B, S, D = h.shape

        # --- mask preprocessing (once per call, shared by all layers) ---
        tq = _pick_tile(S, self.tiles["q"], 8)
        tk = _pick_tile(S, self.tiles["k"], 128)
        nq, nk = S // tq, S // tk
        m2 = attention_mask[0, 0].astype(jnp.float32)                 # [S, S]
        # per-(q-tile, kv-tile) "any unmasked" flags for tile skipping (SMEM)
        tile_flags = (m2.reshape(nq, tq, nk, tk) > -1e30).any(
            axis=(1, 3)).astype(jnp.int32)                            # [nq, nk]
        # clamp to a finite floor and stream the mask in bf16 (half the HBM)
        # TODO(synk): accept per-token image/segment ids to avoid the S^2 mask
        # entirely for very long sequences (interface kept as in the spec).
        mask_b = jnp.maximum(m2, -1e30).astype(self.dtype)[None, None]

        cos = position_embeddings_1.astype(jnp.float32)
        sin = position_embeddings_2.astype(jnp.float32)

        encoder_states = (h,) if self.output_hidden_states else None
        for lp in self.layers:
            h = pixtral_layer(
                h, mask_b, tile_flags, cos, sin, lp,
                num_heads=self.num_heads, head_dim=self.head_dim, eps=self.eps,
                tiles=self.tiles, tile_q=tq, tile_k=tk,
            )
            if self.output_hidden_states:
                encoder_states = encoder_states + (h,)
        # return_dict=False semantics: tuple of present outputs
        if self.output_hidden_states:
            return (h, encoder_states)
        return (h,)


# --------------------------------- main ------------------------------------ #

if __name__ == "__main__":
    key = jax.random.PRNGKey(0)

    # Small, (8,128)-aligned config consistent with a Pixtral-style vision
    # transformer (real: hidden=1024, heads=16, head_dim=64, inter=4096).
    B, S, D = 2, 256, 256
    NUM_HEADS = 2
    HEAD_DIM = D // NUM_HEADS          # 128
    INTERMEDIATE, NUM_LAYERS = 512, 2

    k_model, k_x = jax.random.split(key)
    model = PixtralVisionModelPallas(
        k_model, num_layers=NUM_LAYERS, hidden=D, num_heads=NUM_HEADS,
        intermediate=INTERMEDIATE, eps=1e-5, output_hidden_states=True,
        dtype=jnp.bfloat16,
    )

    # patch embeddings (already projected, as the PyTorch wrapper receives them)
    patch_embeds = jax.random.normal(k_x, (B, S, D), jnp.float32)

    # block-diagonal additive attention mask (two "images" of 128 patches each)
    neg = jnp.finfo(jnp.float32).min
    img_id = jnp.arange(S) // 128
    block = img_id[:, None] == img_id[None, :]
    attention_mask = jnp.where(block, 0.0, neg).astype(jnp.float32)[None, None]

    # rotary cos/sin tables of shape [S, head_dim]
    pos = jnp.arange(S, dtype=jnp.float32)
    inv_freq = 1.0 / (10000.0 ** (jnp.arange(0, HEAD_DIM, 2, dtype=jnp.float32)
                                  / HEAD_DIM))
    freqs = pos[:, None] * inv_freq[None, :]                  # [S, Hd/2]
    emb = jnp.concatenate([freqs, freqs], axis=-1)            # [S, Hd]
    position_embeddings_1 = jnp.cos(emb)
    position_embeddings_2 = jnp.sin(emb)

    out = model(patch_embeds, attention_mask,
                position_embeddings_1, position_embeddings_2)
    last_hidden_state, hidden_states = out
    jax.block_until_ready(last_hidden_state)
    jax.block_until_ready(hidden_states)

    assert last_hidden_state.shape == (B, S, D)
    assert len(hidden_states) == NUM_LAYERS + 1
    assert bool(jnp.all(jnp.isfinite(last_hidden_state.astype(jnp.float32))))
    print("KERNEL_OK")
</pallas_src>

<mosaic_0001>
module attributes {stable_mosaic.version = 11 : i64} {
  func.func @_rmsnorm_matmul_kernel(%arg0: i32, %arg1: i32, %arg2: i32, %arg3: memref<1x128x256xbf16, #tpu.memory_space<vmem>>, %arg4: memref<1x256xf32, #tpu.memory_space<vmem>>, %arg5: memref<256x384xbf16, #tpu.memory_space<vmem>>, %arg6: memref<1x128x384xbf16, #tpu.memory_space<vmem>>, %arg7: memref<128x256xbf16, #tpu.memory_space<vmem>>) attributes {dimension_semantics = [#tpu.dimension_semantics<parallel>, #tpu.dimension_semantics<parallel>, #tpu.dimension_semantics<arbitrary>], iteration_bounds = array<i64: 2, 2, 2>, scalar_prefetch = 0 : i64, scratch_operands = 1 : i64, tpu.core_type = #tpu.core_type<tc>, window_params = [{transform_indices = @transform_0, window_bounds = array<i64: 1, 128, 256>}, {pipeline_mode = #tpu.pipeline_mode<synchronous>, transform_indices = @transform_1, window_bounds = array<i64: 1, 256>}, {transform_indices = @transform_2, window_bounds = array<i64: 256, 384>}, {transform_indices = @transform_3, window_bounds = array<i64: 1, 128, 384>}]} {
    %c0_i32 = arith.constant 0 : i32
    %0 = arith.cmpi eq, %arg2, %c0_i32 : i32
    %1 = arith.extui %0 : i1 to i32
    %c0_i32_0 = arith.constant 0 : i32
    %2 = arith.cmpi ne, %1, %c0_i32_0 : i32
    scf.if %2 {
      %c0_7 = arith.constant 0 : index
      %c0_8 = arith.constant 0 : index
      %c0_9 = arith.constant 0 : index
      %10 = vector.load %arg3[%c0_7, %c0_8, %c0_9] : memref<1x128x256xbf16, #tpu.memory_space<vmem>>, vector<1x128x256xbf16>
      %11 = vector.shape_cast %10 : vector<1x128x256xbf16> to vector<128x256xbf16>
      %12 = arith.extf %11 : vector<128x256xbf16> to vector<128x256xf32>
      %13 = arith.mulf %12, %12 : vector<128x256xf32>
      %cst_10 = arith.constant dense<0.000000e+00> : vector<128xf32>
      %14 = vector.multi_reduction <add>, %13, %cst_10 [1] : vector<128x256xf32> to vector<128xf32>
      %15 = vector.shape_cast %14 : vector<128xf32> to vector<128x1xf32>
      %cst_11 = arith.constant 2.560000e+02 : f32
      %16 = vector.broadcast %cst_11 : f32 to vector<128x1xf32>
      %17 = arith.divf %15, %16 : vector<128x1xf32>
      %cst_12 = arith.constant 9.99999974E-6 : f32
      %18 = vector.broadcast %cst_12 : f32 to vector<128x1xf32>
      %19 = arith.addf %17, %18 : vector<128x1xf32>
      %20 = math.rsqrt %19 : vector<128x1xf32>
      %21 = vector.broadcast %20 : vector<128x1xf32> to vector<128x256xf32>
      %22 = arith.mulf %12, %21 : vector<128x256xf32>
      %c0_13 = arith.constant 0 : index
      %c0_14 = arith.constant 0 : index
      %23 = vector.load %arg4[%c0_13, %c0_14] : memref<1x256xf32, #tpu.memory_space<vmem>>, vector<1x256xf32>
      %24 = vector.broadcast %23 : vector<1x256xf32> to vector<128x256xf32>
      %25 = arith.mulf %22, %24 : vector<128x256xf32>
      %26 = arith.truncf %25 : vector<128x256xf32> to vector<128x256xbf16>
      %c0_15 = arith.constant 0 : index
      %c0_16 = arith.constant 0 : index
      %27 = vector.load %arg7[%c0_15, %c0_16] : memref<128x256xbf16, #tpu.memory_space<vmem>>, vector<128x256xbf16>
      tpu.vector_store %arg7[%c0_15, %c0_16], %26 {strides = array<i32>} : memref<128x256xbf16, #tpu.memory_space<vmem>>, vector<128x256xbf16>,
    } else {
    }
    %c0 = arith.constant 0 : index
    %c0_1 = arith.constant 0 : index
    %3 = vector.load %arg7[%c0, %c0_1] : memref<128x256xbf16, #tpu.memory_space<vmem>>, vector<128x256xbf16>
    %c0_2 = arith.constant 0 : index
    %c0_3 = arith.constant 0 : index
    %4 = vector.load %arg5[%c0_2, %c0_3] : memref<256x384xbf16, #tpu.memory_space<vmem>>, vector<256x384xbf16>
    %cst = arith.constant dense<0.000000e+00> : vector<128x384xf32>
    %5 = tpu.matmul %3, %4, %cst {dimension_numbers = #tpu.dot_dimension_numbers<[1], [0], [0], [1], [0, 0, 1, 1], [], []>} : vector<128x256xbf16>, vector<256x384xbf16>, vector<128x384xf32> -> vector<128x384xf32>
    %6 = arith.truncf %5 : vector<128x384xf32> to vector<128x384xbf16>
    %c0_4 = arith.constant 0 : index
    %c0_5 = arith.constant 0 : index
    %c0_6 = arith.constant 0 : index
    %7 = vector.load %arg6[%c0_4, %c0_5, %c0_6] : memref<1x128x384xbf16, #tpu.memory_space<vmem>>, vector<1x128x384xbf16>
    %8 = vector.shape_cast %7 : vector<1x128x384xbf16> to vector<128x384xbf16>
    %9 = vector.shape_cast %6 : vector<128x384xbf16> to vector<1x128x384xbf16>
    tpu.vector_store %arg6[%c0_4, %c0_5, %c0_6], %9 {strides = array<i32>} : memref<1x128x384xbf16, #tpu.memory_space<vmem>>, vector<1x128x384xbf16>,
    return
  }
  func.func @transform_0(%arg0: i32, %arg1: i32, %arg2: i32) -> (i32, i32, i32) {
    %c0_i32 = arith.constant 0 : i32
    %c0_i32_0 = arith.constant 0 : i32
    return %arg0, %arg1, %c0_i32 : i32, i32, i32
  }
  func.func @transform_1(%arg0: i32, %arg1: i32, %arg2: i32) -> (i32, i32) {
    %c0_i32 = arith.constant 0 : i32
    %c0_i32_0 = arith.constant 0 : i32
    %c0_i32_1 = arith.constant 0 : i32
    return %c0_i32, %c0_i32_0 : i32, i32
  }
  func.func @transform_2(%arg0: i32, %arg1: i32, %arg2: i32) -> (i32, i32) {
    %c0_i32 = arith.constant 0 : i32
    %c0_i32_0 = arith.constant 0 : i32
    return %c0_i32, %arg2 : i32, i32
  }
  func.func @transform_3(%arg0: i32, %arg1: i32, %arg2: i32) -> (i32, i32, i32) {
    %c0_i32 = arith.constant 0 : i32
    return %arg0, %arg1, %arg2 : i32, i32, i32
  }
}

</mosaic_0001>

<bundles_post_ra>
// kernel: tpu_custom_call.1
= control target key start
LH: loop header
LB: loop body
LE: loop exit
PB: predicated region body
PF: predicated region fallthrough
CT: control target
= control target key end

     0   :  { %s2819_s0 = inlined_call_operand.hbm [shape: bf16[2,256,256], index: 0, kind: input, shape index: {}]   ;;  %s2820_s1 = inlined_call_operand.vmem [shape: f32[1,256], index: 1, kind: input, shape index: {}]   ;;  %s2821_s2 = inlined_call_operand.hbm [shape: bf16[256,768], index: 2, kind: input, shape index: {}]   ;;  %s2822_s3 = inlined_call_operand.hbm [shape: bf16[2,256,768], index: 3, kind: output, shape index: {}]  }
   0x1   :  { %2835 = sst [smem:[#allocation21_spill]] %s2819_s0 }
   0x2   :  { %2836 = sst [smem:[#allocation22_spill]] %s2820_s1 }
   0x3   :  { %2837 = sst [smem:[#allocation23_spill]] %s2822_s3 }
   0x4   :  { %8 = vsyncpa [#allocation4], 0 }
   0x5   :  { %10 = vsyncpa [#allocation4 + $0x1], 0 }
   0x6   :  { %11 = vsyncpa [#allocation7], 0 }
   0x7   :  { %13 = vsyncpa [#allocation7 + $0x1], 0 }
   0x8   :  { %14 = vsyncpa [#allocation5], 0 }
   0x9   :  { %16 = vsyncpa [#allocation5 + $0x1], 0  ;;  %s2140_s12 = smov 0   ;;  %s2142_s13 = smov 0  }
   0xa   :  { %s2144_s14 = smov 0   ;;  %s2146_s15 = smov 0  }
   0xb   :  { %s2148_s16 = smov 0   ;;  %s2150_s17 = smov 0  }
   0xc   :  { %s2152_s18 = smov 0   ;;  %s2154_s19 = smov 0  }
   0xd   :  { %s2156_s20 = smov 0   ;;  %s2158_s21 = smov 0  }
   0xe   :  { %s2160_s22 = smov 0   ;;  %s2162_s23 = smov 0  }
   0xf   :  { %s2164_s24 = smov 0   ;;  %s2166_s25 = smov 0  }
  0x10   :  { %s2168_s26 = smov 0   ;;  %s2170_s27 = smov 0  }
  0x11 LB: > { %2838 = sst [smem:[#allocation12_spill]] %s2047_s12  ;;  %s1429_s28 = sadd.s32 4294967295, %s2107_s27   ;;  %s2107_s27 = sphi %s2170_s27, %s22_s27   ;;  %s2103_s26 = sphi %s2168_s26, %s2896_s26   ;;  %s2099_s25 = sphi %s2166_s25, %s2882_s25   ;;  %s2095_s24 = sphi %s2164_s24, %s2895_s24   ;;  %s2091_s23 = sphi %s2162_s23, %s2894_s23   ;;  %s2087_s22 = sphi %s2160_s22, %s2880_s22   ;;  %s2083_s21 = sphi %s2158_s21, %s2893_s21   ;;  %s2079_s20 = sphi %s2156_s20, %s2892_s20   ;;  %s2075_s19 = sphi %s2154_s19, %s2891_s19   ;;  %s2071_s18 = sphi %s2152_s18, %s2890_s18   ;;  %s2067_s17 = sphi %s2150_s17, %s2889_s17   ;;  %s2063_s16 = sphi %s2148_s16, %s2888_s16   ;;  %s2059_s15 = sphi %s2146_s15, %s2887_s15   ;;  %s2055_s14 = sphi %s2144_s14, %s2886_s14   ;;  %s2051_s13 = sphi %s2142_s13, %s2885_s13   ;;  %s2047_s12 = sphi %s2140_s12, %s2883_s12  }
  0x12   : > { %2839 = sst [smem:[#allocation13_spill]] %s2083_s21  ;;  %p57_p0 = scmp.ne.s32.totalorder %s2079_s20, %s2075_s19 }
  0x13   : > { %2840 = sst [smem:[#allocation14_spill]] %s2087_s22  ;;  %p2825_p1 = scmp.eq.s32.totalorder %s2107_s27, 0 }
  0x14   : > { %2841 = sst [smem:[#allocation15_spill]] %s2091_s23  ;;  %p63_p2 = scmp.ne.s32.totalorder %s2075_s19, %s2071_s18 }
  0x15   : > { %2842 = sst [smem:[#allocation16_spill]] %s2099_s25  ;;  %p2226_p3 = scmp.eq.s32.totalorder %s1429_s28, 0 }
  0x16   : > { %p2232_p4 = por %p2825_p1, %p57_p0  ;;  %p2236_p5 = scmp.eq.s32.totalorder %s1429_s28, 7 }
  0x17   : > { %p2242_p6 = por %p2226_p3, %p63_p2  ;;  %p2824_p7 = scmp.lt.s32.totalorder %s2107_s27, 8 }
  0x18   : > { %s2845_s7 = scalar_select %p2236_p5, 1, 0 }
  0x19   : > { %s2846_s8 = scalar_select %p2242_p6, 1, 0 }
  0x1a   : > { %s167_s9 = sand.u32 1, %s2079_s20   ;;  %s1527_s11 = sshll.u32 %s2099_s25, 5 }
  0x1b   : > { %s1433_s10 = sshll.u32 %s167_s9, 7  ;;  %s1436_s18 = sshll.u32 %s2103_s26, 6 }
  0x1c   : > { %s171_s4 = scalar_lea.vmem [#allocation3], %s1433_s10  ;;  %s178_s29 = sadd.s32 %s1527_s11, %s1436_s18 }
  0x1d   : > { %s181_s30 = sshll.u32 %s171_s4, 4  ;;  %s1437_s3 = sshll.u32 %s178_s29, 6  ;;  %s2250_s30 = int_to_ptr.vmem [resolvable:$true] %s181_s30 }
  0x1e   : > { %p2256_p8 = pnand %p2824_p7, %p2232_p4  ;;  %s2848_s0 = sld [smem:[#allocation21_spill]] }
  0x1f   : > { %s2265_s4 = scalar_lea.sflag [#allocation4], %s167_s9 }
  0x20   : > { %p1883_p10 = pneg %p2256_p8 }
  0x24   : > { %s2263_s1 = scalar_lea.hbm %s2848_s0, %s1437_s3  ;;  %s1886_s23 = scalar_lea.hbm %s2848_s0, 8192 }
  0x25   : > { %s1881_s29 = scalar_lea.hbm %s2263_s1, 2048  ;;  %p1887_p13 = scmp.lt.u32.totalorder %s2263_s1, %s2848_s0 }
  0x26   : > { %p1882_p9 = scmp.ne.s32.totalorder %s2263_s1, %s1881_s29  ;;  %p1888_p0 = scmp.lt.u32.totalorder %s1886_s23, %s1881_s29 }
  0x27   : > { %p1890_p4 = scmp.lt.u32.totalorder %s1881_s29, %s2263_s1 }
  0x28   : > { %p1884_p11 = pnand %p1883_p10, %p1882_p9  ;;  %p1889_p2 = por %p1888_p0, %p1887_p13 }
  0x2a   : > { %p1885_p12 = pneg %p1884_p11  ;;  %p1891_p7 = por %p1890_p4, %p1889_p2 }
  0x2c   : > { %p1892_p1 = pnand %p1891_p7, %p1885_p12 }
  0x2e   : > { %1895 = shalt.err (!%p1892_p1)
}
  0x2f   : > { %s1896_s9 = scalar_lea.vmem %s2250_s30, 2048  ;;  %s2109_s11 = smov [#allocation3]  }
  0x30   : > { %p1897_p9 = scmp.ne.s32.totalorder %s2250_s30, %s1896_s9  ;;  %s1901_s18 = sshll.u32 %s2109_s11, 4  ;;  %s1902_s18 = int_to_ptr.vmem [resolvable:$false] %s1901_s18 }
  0x31   : > { %s1903_s6 = scalar_lea.vmem %s1902_s18, 4096  ;;  %p1904_p5 = scmp.lt.s32.totalorder %s2250_s30, %s1902_s18 }
  0x32   : > { %p1899_p11 = pnand %p1897_p9, %p1883_p10  ;;  %p1905_p13 = scmp.lt.s32.totalorder %s1903_s6, %s1896_s9 }
  0x34   : > { %p1900_p6 = pneg %p1899_p11  ;;  %p1906_p0 = por %p1905_p13, %p1904_p5 }
  0x36   : > { %p1907_p2 = pnand %p1906_p0, %p1900_p6 }
  0x38   : > { %1910 = shalt.err (!%p1907_p2)
}
  0x39   : > { %s2110_s29 = smov 128   ;;  %s2111_s22 = smov 8  }
  0x3a   : > { %1639 = dma.hbm_to_vmem [thread:$0]  (!%p2256_p8), %s2263_s1, 2048, %s2250_s30, %s2265_s4, %s2110_s29, %s2110_s29, %s2111_s22  }
  0x3b   : > { %p1439_p1 = scmp.ge.s32.totalorder %s2107_s27, 1  ;;  %p210_p5 = scmp.lt.s32.totalorder %s2107_s27, 9 }
  0x3c   : > { %s1430_s3 = sadd.s32 4294967294, %s2107_s27   ;;  %s34_s10 = sadd.s32 1, %s2095_s24 }
  0x3d   : > { %p2295_p6 = pnand %p1439_p1, %p210_p5  ;;  %s97_s9 = sadd.s32 1, %s2067_s17 }
  0x3e   : > { %p35_p7 = scmp.ge.s32.totalorder %s34_s10, 2  ;;  %p104_p10 = scmp.ne.s32.totalorder %s2067_s17, %s2063_s16 }
  0x3f   : > { %p110_p8 = scmp.ne.s32.totalorder %s2063_s16, %s2059_s15  ;;  %s127_s1 = sadd.s32 1, %s2055_s14 }
  0x40   : > { %s2898_s10 = smov (%p35_p7, %s34_s10), 0  ;;  %s2851_s30 = sadd.s32 1, %s2099_s25 }
  0x41   : > { %2850 = sst [smem:[#allocation17_spill]] %s2898_s10  ;;  %s2900_s30 = smov (!%p35_p7, %s2851_s30), %s2099_s25 }
  0x42   : > { %s94_s28 = ssub.s32 %s2095_s24, %s2898_s10  ;;  %p2852_p12 = scmp.eq.s32.totalorder %s2107_s27, 0 }
  0x43   : > { %p39_p9 = scmp.ge.s32.totalorder %s2900_s30, 2  ;;  %p95_p11 = scmp.eq.s32.totalorder %s94_s28, 0 }
  0x44   : > { %p2316_p4 = por %p104_p10, %p2852_p12  ;;  %p2322_p13 = por %p110_p8, %p2226_p3 }
  0x45   : > { %p137_p0 = scmp.ne.s32.totalorder %s2055_s14, %s2051_s13  ;;  %s2902_s30 = smov (%p39_p9, %s2900_s30), 0 }
  0x46   : > { %s2854_s15 = scalar_select %p2322_p13, 1, 0 }
  0x47   : > { %2855 = sst [smem:[#allocation18_spill]] %s2902_s30  ;;  %s2856_s11 = sadd.s32 1, %s2103_s26 }
  0x48   : > { %s2904_s11 = smov (!%p39_p9, %s2856_s11), %s2103_s26  ;;  %s46_s18 = ssub.s32 %s2099_s25, %s2902_s30 }
  0x49   : > { %p2857_p2 = scmp.ne.s32.totalorder %s2845_s7, 0  ;;  %p43_p3 = scmp.ge.s32.totalorder %s2904_s11, 2 }
  0x4a   : > { %p143_p5 = scmp.ne.s32.totalorder %s2051_s13, %s2047_s12  ;;  %p144_p7 = scmp.eq.s32.totalorder %s1430_s3, 7 }
  0x4b   : > { %p2337_p1 = por %p2857_p2, %p137_p0  ;;  %s2906_s11 = smov (%p43_p3, %s2904_s11), 0 }
  0x4c   : > { %s2344_s5 = scalar_select %p95_p11, %s2067_s17, %s97_s9  }
  0x4d   : > { %s2858_s6 = scalar_select %p2337_p1, 1, 0 }
  0x4e   : > { %2860 = sst [smem:[#allocation20_spill]] %s2344_s5  ;;  %s191_s29 = sand.u32 1, %s2067_s17  }
  0x4f   : > { %2859 = sst [smem:[#allocation19_spill]] %s2858_s6  ;;  %s45_s22 = ssub.s32 %s2103_s26, %s2906_s11 }
  0x50   : > { %s47_s0 = sor.u32 %s46_s18, %s45_s22  ;;  %p2351_p10 = por %p144_p7, %p143_p5 }
  0x51   : > { %p48_p8 = scmp.eq.s32.totalorder %s47_s0, 0  ;;  %s124_s30 = sor.u32 %s94_s28, %s47_s0 }
  0x52   : > { %s2861_s7 = scalar_select %p2351_p10, 1, 0 }
  0x53   : > { %p125_p12 = scmp.eq.s32.totalorder %s124_s30, 0  ;;  %s1625_s10 = smul.u32 384, %s191_s29 }
  0x54   : > { %s2862_s25 = sadd.s32 1, %s2079_s20  ;;  %s1528_s12 = smul.u32 192, %s2095_s24 }
  0x55   : > { %s2358_s9 = scalar_select %p48_p8, %s2079_s20, %s2862_s25  }
  0x56   : > { %s2361_s5 = scalar_select %p125_p12, %s2055_s14, %s127_s1  }
  0x57   : > { %s195_s6 = scalar_lea.vmem [#allocation6], %s1625_s10  ;;  %p2863_p9 = scmp.lt.s32.totalorder %s2107_s27, 8 }
  0x58   : > { %s202_s21 = sshll.u32 %s195_s6, 4  ;;  %s2375_s0 = scalar_lea.hbm %s2821_s2, %s1528_s12  ;;  %s2377_s21 = int_to_ptr.vmem [resolvable:$true] %s202_s21 }
  0x59   : > { %p2368_p11 = pnand %p2863_p9, %p2316_p4  ;;  %s2379_s25 = scalar_lea.sflag [#allocation7], %s191_s29 }
  0x5a   : > { %s1911_s10 = scalar_lea.hbm %s2375_s0, 6144  ;;  %s1916_s12 = scalar_lea.hbm %s2821_s2, 12288 }
  0x5b   : > { %p1912_p4 = scmp.ne.s32.totalorder %s2375_s0, %s1911_s10  ;;  %p1913_p0 = pneg %p2368_p11 }
  0x5c   : > { %p1917_p5 = scmp.lt.u32.totalorder %s2375_s0, %s2821_s2  ;;  %p1918_p7 = scmp.lt.u32.totalorder %s1916_s12, %s1911_s10 }
  0x5d   : > { %p1914_p2 = pnand %p1913_p0, %p1912_p4  ;;  %p1920_p12 = scmp.lt.u32.totalorder %s1911_s10, %s2375_s0 }
  0x5e   : > { %p1919_p8 = por %p1918_p7, %p1917_p5 }
  0x5f   : > { %p1915_p3 = pneg %p1914_p2 }
  0x60   : > { %p1921_p9 = por %p1920_p12, %p1919_p8 }
  0x62   : > { %p1922_p10 = pnand %p1921_p9, %p1915_p3 }
  0x64   : > { %1925 = shalt.err (!%p1922_p10)
}
  0x65   : > { %s1926_s6 = scalar_lea.vmem %s2377_s21, 6144  ;;  %s2112_s29 = smov [#allocation6]  }
  0x66   : > { %p1927_p4 = scmp.ne.s32.totalorder %s2377_s21, %s1926_s6  ;;  %s1931_s18 = sshll.u32 %s2112_s29, 4  ;;  %s1932_s18 = int_to_ptr.vmem [resolvable:$false] %s1931_s18 }
  0x67   : > { %s1933_s22 = scalar_lea.vmem %s1932_s18, 12288  ;;  %p1934_p13 = scmp.lt.s32.totalorder %s2377_s21, %s1932_s18 }
  0x68   : > { %p1929_p2 = pnand %p1927_p4, %p1913_p0  ;;  %p1935_p5 = scmp.lt.s32.totalorder %s1933_s22, %s1926_s6 }
  0x6a   : > { %p1930_p1 = pneg %p1929_p2  ;;  %p1936_p7 = por %p1935_p5, %p1934_p13 }
  0x6c   : > { %p1937_p8 = pnand %p1936_p7, %p1930_p1 }
  0x6e   : > { %1940 = shalt.err (!%p1937_p8)
}
  0x6f   : > { %s2113_s10 = smov 384   ;;  %s2114_s1 = smov 192  }
  0x70   : > { %s2115_s30 = smov 12   ;;  %214 = sbr.rel (%p2295_p6) target bundleno = 691 (0x2b3), region = 32 }
  0x71   : > { %1642 = dma.hbm_to_vmem [thread:$0]  (!%p2368_p11), %s2375_s0, 6144, %s2377_s21, %s2379_s25, %s2113_s10, %s2114_s1, %s2115_s30  }
  0x72   : > { %s216_s12 = sand.u32 (!%p2295_p6), 1, %s2075_s19   ;;  %p2865_p13 = scmp.ne.s32.totalorder (!%p2295_p6), %s2846_s8, 0 }
  0x73   : > { %s1440_s28 = sshll.u32 (!%p2295_p6), %s216_s12, 7  ;;  %s217_s4 = scalar_lea.sflag (!%p2295_p6), [#allocation4], %s216_s12 }
  0x74   : > { %s2410_s6 = scalar_lea.vmem (!%p2295_p6), [#allocation3], %s1440_s28 }
  0x77   : > { %2034 = dma.done.wait (%p2865_p13), %s217_s4, 2048  }
  0x78   : > { %2036 = vsyncadd (%p2865_p13), %s217_s4, 4294965248  ;;  %s225_s29 = sand.u32 1, %s2063_s16   ;;  %p2866_p6 = scmp.ne.s32.totalorder %s2854_s15, 0 }
  0x79   : > { %s1626_s3 = smul.u32 384, %s225_s29  ;;  %s226_s21 = scalar_lea.sflag [#allocation7], %s225_s29 }
  0x7b   : > { %s2417_s0 = scalar_lea.vmem [#allocation6], %s1626_s3 }
  0x7c   : > { %2038 = dma.done.wait (%p2866_p6), %s226_s21, 6144  }
  0x7d   : > { %2040 = vsyncadd (%p2866_p6), %s226_s21, 4294961152  ;;  %s254_s23 = sand.u32 1, %s2051_s13   ;;  %s2867_s8 = sld [smem:[#allocation13_spill]] }
  0x7e   : > { %s1627_s25 = smul.u32 192, %s254_s23 }
  0x80   : > { %s2426_s18 = scalar_lea.vmem [#allocation8], %s1627_s25 }
  0x83   : > { %p1441_p1 = scmp.ne.s32.totalorder %s2867_s8, 0 }
  0x84   : > { %v268_v0 = vld [vmem:[%s2410_s6 + $0x10] sm:$0xff] (!%p1441_p1)  ;;  %v266_v1 = vld [vmem:[%s2410_s6] sm:$0xff] (!%p1441_p1)  ;;  %v269_v2 = vld [vmem:[%s2410_s6 + $0x18] sm:$0xff] (!%p1441_p1)  ;;  %s2868_s10 = sld [smem:[#allocation22_spill]] (!%p1441_p1) }
  0x85   : > { %265 = sbr.rel (%p1441_p1) target bundleno = 337 (0x151), region = 44  ;;  %v2432_v3 = vunpack.c.l.bf16 (!%p1441_p1), %v268_v0  ;;  %v2434_v4 = vunpack.c.h.bf16 (!%p1441_p1), %v268_v0  ;;  %v2436_v5 = vunpack.c.l.bf16 (!%p1441_p1), %v266_v1  ;;  %v2438_v6 = vunpack.c.h.bf16 (!%p1441_p1), %v266_v1  ;;  %v267_v7 = vld [vmem:[%s2410_s6 + $0x8] sm:$0xff] (!%p1441_p1)  ;;  %v270_v17 = vld [vmem:[%s2410_s6 + $0x20] sm:$0xff] (!%p1441_p1)  ;;  %v273_v22 = vld [vmem:[%s2410_s6 + $0x38] sm:$0xff] (!%p1441_p1) }
  0x86   : > { %v2441_v8 = vunpack.c.l.bf16 (!%p1441_p1), %v269_v2  ;;  %v2443_v9 = vunpack.c.h.bf16 (!%p1441_p1), %v269_v2  ;;  %v2445_v10 = vunpack.c.l.bf16 (!%p1441_p1), %v267_v7  ;;  %v2447_v11 = vunpack.c.h.bf16 (!%p1441_p1), %v267_v7  ;;  %v271_v12 = vld [vmem:[%s2410_s6 + $0x28] sm:$0xff] (!%p1441_p1)  ;;  %v272_v27 = vld [vmem:[%s2410_s6 + $0x30] sm:$0xff] (!%p1441_p1)  ;;  %v274_v41 = vld [vmem:[%s2410_s6 + $0x40] sm:$0xff] (!%p1441_p1) }
  0x87   : > { %v318_v13 = vmul.f32 (!%p1441_p1), %v2432_v3, %v2432_v3  ;;  %v319_v14 = vmul.f32 (!%p1441_p1), %v2434_v4, %v2434_v4  ;;  %v314_v15 = vmul.f32 (!%p1441_p1), %v2436_v5, %v2436_v5  ;;  %v315_v16 = vmul.f32 (!%p1441_p1), %v2438_v6, %v2438_v6  ;;  %v275_v36 = vld [vmem:[%s2410_s6 + $0x48] sm:$0xff] (!%p1441_p1)  ;;  %v277_v48 = vld [vmem:[%s2410_s6 + $0x58] sm:$0xff] (!%p1441_p1)  ;;  %v276_v53 = vld [vmem:[%s2410_s6 + $0x50] sm:$0xff] (!%p1441_p1) }
  0x88   : > { %v320_v18 = vmul.f32 (!%p1441_p1), %v2441_v8, %v2441_v8  ;;  %v321_v19 = vmul.f32 (!%p1441_p1), %v2443_v9, %v2443_v9  ;;  %v316_v20 = vmul.f32 (!%p1441_p1), %v2445_v10, %v2445_v10  ;;  %v317_v21 = vmul.f32 (!%p1441_p1), %v2447_v11, %v2447_v11  ;;  %v279_v61 = vld [vmem:[%s2410_s6 + $0x68] sm:$0xff] (!%p1441_p1)  ;;  %v278_v1 = vld [vmem:[%s2410_s6 + $0x60] sm:$0xff] (!%p1441_p1) }
  0x89   : > { %v352_v23 = vadd.f32 (!%p1441_p1), %v319_v14, %v318_v13  ;;  %v346_v24 = vadd.f32 (!%p1441_p1), %v315_v16, %v314_v15  ;;  %v2468_v25 = vunpack.c.l.bf16 (!%p1441_p1), %v271_v12  ;;  %v2470_v26 = vunpack.c.h.bf16 (!%p1441_p1), %v271_v12 }
  0x8a   : > { %v355_v28 = vadd.f32 (!%p1441_p1), %v321_v19, %v320_v18  ;;  %v349_v29 = vadd.f32 (!%p1441_p1), %v317_v21, %v316_v20  ;;  %v2473_v30 = vunpack.c.l.bf16 (!%p1441_p1), %v270_v17  ;;  %v2475_v31 = vunpack.c.h.bf16 (!%p1441_p1), %v270_v17  ;;  %v281_v20 = vld [vmem:[%s2410_s6 + $0x78] sm:$0xff] (!%p1441_p1)  ;;  %v280_v21 = vld [vmem:[%s2410_s6 + $0x70] sm:$0xff] (!%p1441_p1) }
  0x8b   : > { %353 = vadd.xlane.f32.xlu1 (!%p1441_p1), %v352_v23  ;;  %347 = vadd.xlane.f32.xlu0 (!%p1441_p1), %v346_v24  ;;  %v324_v32 = vmul.f32 (!%p1441_p1), %v2468_v25, %v2468_v25  ;;  %v325_v33 = vmul.f32 (!%p1441_p1), %v2470_v26, %v2470_v26  ;;  %v2481_v34 = vunpack.c.l.bf16 (!%p1441_p1), %v273_v22  ;;  %v2483_v35 = vunpack.c.h.bf16 (!%p1441_p1), %v273_v22 }
  0x8c   : > { %v322_v37 = vmul.f32 %v2473_v30, %v2473_v30  ;;  %v323_v38 = vmul.f32 %v2475_v31, %v2475_v31  ;;  %v2490_v39 = vunpack.c.l.bf16 %v272_v27  ;;  %v2492_v40 = vunpack.c.h.bf16 %v272_v27 }
  0x8d   : > { %v328_v42 = vmul.f32 %v2481_v34, %v2481_v34  ;;  %v329_v43 = vmul.f32 %v2483_v35, %v2483_v35  ;;  %v361_v44 = vadd.f32 %v325_v33, %v324_v32  ;;  %v2503_v47 = vunpack.c.l.bf16 %v275_v36 }
  0x8e   : > { %v326_v45 = vmul.f32 %v2490_v39, %v2490_v39  ;;  %v327_v46 = vmul.f32 %v2492_v40, %v2492_v40  ;;  %v358_v49 = vadd.f32 %v323_v38, %v322_v37  ;;  %v2506_v50 = vunpack.c.h.bf16 %v275_v36 }
  0x8f   : > { %356 = vadd.xlane.f32.xlu1 %v355_v28  ;;  %350 = vadd.xlane.f32.xlu0 %v349_v29  ;;  %v2508_v51 = vunpack.c.l.bf16 %v274_v41  ;;  %v2510_v52 = vunpack.c.h.bf16 %v274_v41  ;;  %v367_v54 = vadd.f32 %v329_v43, %v328_v42  ;;  %v2513_v55 = vunpack.c.l.bf16 %v277_v48 }
  0x90   : > { %v2515_v56 = vunpack.c.h.bf16 %v277_v48  ;;  %v364_v57 = vadd.f32 %v327_v46, %v326_v45  ;;  %v332_v58 = vmul.f32 %v2503_v47, %v2503_v47  ;;  %v2519_v59 = vunpack.c.l.bf16 %v276_v53 }
  0x91   : > { %v2521_v60 = vunpack.c.h.bf16 %v276_v53  ;;  %v333_v62 = vmul.f32 %v2506_v50, %v2506_v50  ;;  %v330_v63 = vmul.f32 %v2508_v51, %v2508_v51  ;;  %v331_v0 = vmul.f32 %v2510_v52, %v2510_v52 }
  0x92   : > { %v336_v2 = vmul.f32 %v2513_v55, %v2513_v55  ;;  %v337_v7 = vmul.f32 %v2515_v56, %v2515_v56  ;;  %v2535_v12 = vunpack.c.l.bf16 %v279_v61  ;;  %v334_v13 = vmul.f32 %v2519_v59, %v2519_v59 }
  0x93   : > { %362 = vadd.xlane.f32.xlu1 %v361_v44  ;;  %359 = vadd.xlane.f32.xlu0 %v358_v49  ;;  %v335_v14 = vmul.f32 %v2521_v60, %v2521_v60  ;;  %v2541_v15 = vunpack.c.h.bf16 %v279_v61  ;;  %v373_v16 = vadd.f32 %v333_v62, %v332_v58  ;;  %v370_v17 = vadd.f32 %v331_v0, %v330_v63 }
  0x94   : > { %v2543_v18 = vunpack.c.l.bf16 %v278_v1  ;;  %v2545_v19 = vunpack.c.h.bf16 %v278_v1  ;;  %v379_v22 = vadd.f32 %v337_v7, %v336_v2  ;;  %v340_v23 = vmul.f32 %v2535_v12, %v2535_v12 }
  0x95   : > { %v376_v24 = vadd.f32 %v335_v14, %v334_v13  ;;  %v341_v27 = vmul.f32 %v2541_v15, %v2541_v15  ;;  %v2553_v28 = vunpack.c.l.bf16 %v281_v20  ;;  %v2555_v29 = vunpack.c.h.bf16 %v281_v20 }
  0x96   : > { %v338_v32 = vmul.f32 %v2543_v18, %v2543_v18  ;;  %v339_v33 = vmul.f32 %v2545_v19, %v2545_v19  ;;  %v2561_v36 = vunpack.c.l.bf16 %v280_v21  ;;  %v2563_v37 = vunpack.c.h.bf16 %v280_v21 }
  0x97   : > { %368 = vadd.xlane.f32.xlu1 %v367_v54  ;;  %365 = vadd.xlane.f32.xlu0 %v364_v57  ;;  %v385_v38 = vadd.f32 %v341_v27, %v340_v23  ;;  %v344_v41 = vmul.f32 %v2553_v28, %v2553_v28  ;;  %v345_v42 = vmul.f32 %v2555_v29, %v2555_v29  ;;  %v477_v58 = vlaneseq }
  0x98   : > { %v382_v43 = vadd.f32 %v339_v33, %v338_v32  ;;  %v342_v44 = vmul.f32 %v2561_v36, %v2561_v36  ;;  %v343_v45 = vmul.f32 %v2563_v37, %v2563_v37  ;;  %v475_v32 = vld [vmem:[%s2868_s10] sm:$0x3] }
  0x99   : > { %v391_v46 = vadd.f32 %v345_v42, %v344_v41  ;;  %v478_v7 = vshrl.u32 %v477_v58, 7 }
  0x9a   : > { %v388_v48 = vadd.f32 %v343_v45, %v342_v44 }
  0x9b   : > { %374 = vadd.xlane.f32.xlu1 %v373_v16  ;;  %371 = vadd.xlane.f32.xlu0 %v370_v17  ;;  %v483_v23 = vsub.s32 1, %v478_v7 }
  0x9d   : > { %v2578_v45 = vrot.slane %v475_v32, %v483_v23 }
  0x9f   : > { %380 = vadd.xlane.f32.xlu1 %v379_v22  ;;  %377 = vadd.xlane.f32.xlu0 %v376_v24  ;;  %v479_v22 = vsub.s32 0, %v478_v7 }
  0xa1   : > { %v2576_v44 = vrot.slane %v475_v32, %v479_v22 }
  0xa3   : > { %386 = vadd.xlane.f32.xlu1 %v385_v38  ;;  %383 = vadd.xlane.f32.xlu0 %v382_v43 }
  0xa7   : > { %392 = vadd.xlane.f32.xlu1 %v391_v46  ;;  %389 = vadd.xlane.f32.xlu0 %v388_v48 }
 0x118   : > { %v354_v49 = vpop.xlane.xlu1 %353  ;;  %v348_v53 = vpop.xlane.xlu0 %347 }
 0x119   : > { %v397_v54 = vmul.f32 0.00390625, %v354_v49  ;;  %v395_v57 = vmul.f32 0.00390625, %v348_v53 }
 0x11b   : > { %v413_v61 = vadd.f32 1e-05, %v397_v54  ;;  %v411_v62 = vadd.f32 1e-05, %v395_v57 }
 0x11c   : > { %v357_v63 = vpop.xlane.xlu1 %356  ;;  %v351_v0 = vpop.xlane.xlu0 %350 }
 0x11d   : > { %1785 = vrsqrt.f32 %v413_v61  ;;  %v398_v1 = vmul.f32 0.00390625, %v357_v63  ;;  %v396_v2 = vmul.f32 0.00390625, %v351_v0 }
 0x11e   : > { %1787 = vrsqrt.f32 %v411_v62 }
 0x11f   : > { %v414_v13 = vadd.f32 1e-05, %v398_v1  ;;  %v412_v14 = vadd.f32 1e-05, %v396_v2 }
 0x120   : > { %v363_v16 = vpop.xlane.xlu1 %362  ;;  %v360_v17 = vpop.xlane.xlu0 %359 }
 0x121   : > { %1789 = vrsqrt.f32 %v414_v13  ;;  %v400_v20 = vmul.f32 0.00390625, %v363_v16  ;;  %v399_v21 = vmul.f32 0.00390625, %v360_v17 }
 0x122   : > { %1791 = vrsqrt.f32 %v412_v14 }
 0x123   : > { %v416_v24 = vadd.f32 1e-05, %v400_v20  ;;  %v415_v27 = vadd.f32 1e-05, %v399_v21 }
 0x124   : > { %v369_v33 = vpop.xlane.xlu1 %368  ;;  %v366_v38 = vpop.xlane.xlu0 %365 }
 0x125   : > { %1793 = vrsqrt.f32 %v416_v24  ;;  %v402_v41 = vmul.f32 0.00390625, %v369_v33  ;;  %v401_v42 = vmul.f32 0.00390625, %v366_v38 }
 0x126   : > { %1795 = vrsqrt.f32 %v415_v27 }
 0x127   : > { %v1786_v43 = vpop.eup %1785  ;;  %v418_v46 = vadd.f32 1e-05, %v402_v41  ;;  %v417_v48 = vadd.f32 1e-05, %v401_v42 }
 0x128   : > { %v1788_v49 = vpop.eup %1787  ;;  %v447_v53 = vmul.f32 %v1786_v43, %v2432_v3  ;;  %v448_v54 = vmul.f32 %v1786_v43, %v2434_v4  ;;  %v375_v57 = vpop.xlane.xlu1 %374 }
 0x129   : > { %v372_v58 = vpop.xlane.xlu0 %371  ;;  %v443_v61 = vmul.f32 %v1788_v49, %v2436_v5  ;;  %1797 = vrsqrt.f32 %v418_v46  ;;  %v404_v62 = vmul.f32 0.00390625, %v375_v57  ;;  %v444_v7 = vmul.f32 %v1788_v49, %v2438_v6 }
 0x12a   : > { %1799 = vrsqrt.f32 %v417_v48  ;;  %v403_v63 = vmul.f32 0.00390625, %v372_v58  ;;  %v491_v1 = vmul.f32 %v2576_v44, %v447_v53  ;;  %v492_v2 = vmul.f32 %v2578_v45, %v448_v54 }
 0x12b   : > { %v1790_v0 = vpop.eup %1789  ;;  %v420_v13 = vadd.f32 1e-05, %v404_v62  ;;  %v487_v3 = vmul.f32 %v2576_v44, %v443_v61 }
 0x12c   : > { %v1792_v14 = vpop.eup %1791  ;;  %v449_v4 = vmul.f32 %v1790_v0, %v2441_v8  ;;  %v450_v16 = vmul.f32 %v1790_v0, %v2443_v9  ;;  %v419_v5 = vadd.f32 1e-05, %v403_v63  ;;  %v381_v17 = vpop.xlane.xlu1 %380  ;;  %v488_v8 = vmul.f32 %v2578_v45, %v444_v7 }
 0x12d   : > { %v378_v20 = vpop.xlane.xlu0 %377  ;;  %v445_v21 = vmul.f32 %v1792_v14, %v2445_v10  ;;  %v446_v22 = vmul.f32 %v1792_v14, %v2447_v11  ;;  %1801 = vrsqrt.f32 %v420_v13  ;;  %v406_v23 = vmul.f32 0.00390625, %v381_v17 }
 0x12e   : > { %v493_v24 = vmul.f32 %v2576_v44, %v449_v4  ;;  %v494_v6 = vmul.f32 %v2578_v45, %v450_v16  ;;  %1803 = vrsqrt.f32 %v419_v5  ;;  %v405_v27 = vmul.f32 0.00390625, %v378_v20 }
 0x12f   : > { %v1794_v32 = vpop.eup %1793  ;;  %v489_v9 = vmul.f32 %v2576_v44, %v445_v21  ;;  %v490_v33 = vmul.f32 %v2578_v45, %v446_v22  ;;  %v422_v38 = vadd.f32 1e-05, %v406_v23 }
 0x130   : > { %v1796_v41 = vpop.eup %1795  ;;  %v521_v10 = vpack.c.bf16 %v493_v24, %v491_v1  ;;  %v522_v42 = vpack.c.bf16 %v494_v6, %v492_v2  ;;  %v453_v11 = vmul.f32 %v1794_v32, %v2468_v25  ;;  %v454_v43 = vmul.f32 %v1794_v32, %v2470_v26  ;;  %v387_v46 = vpop.xlane.xlu1 %386 }
 0x131   : > { %v384_v48 = vpop.xlane.xlu0 %383  ;;  %v519_v49 = vpack.c.bf16 %v489_v9, %v487_v3  ;;  %v520_v53 = vpack.c.bf16 %v490_v33, %v488_v8  ;;  %v451_v54 = vmul.f32 %v1796_v41, %v2473_v30  ;;  %v452_v57 = vmul.f32 %v1796_v41, %v2475_v31 }
 0x132   : > { %537 = vst [vmem:[#allocation2 + $0x10] sm:$0xff] %v521_v10  ;;  %538 = vst [vmem:[#allocation2 + $0x18] sm:$0xff] %v522_v42  ;;  %v497_v58 = vmul.f32 %v2576_v44, %v453_v11  ;;  %v498_v61 = vmul.f32 %v2578_v45, %v454_v43  ;;  %1805 = vrsqrt.f32 %v422_v38  ;;  %v421_v62 = vadd.f32 1e-05, %v405_v27 }
 0x133   : > { %v1798_v63 = vpop.eup %1797  ;;  %535 = vst [vmem:[#allocation2] sm:$0xff] %v519_v49  ;;  %536 = vst [vmem:[#allocation2 + $0x8] sm:$0xff] %v520_v53  ;;  %v495_v25 = vmul.f32 %v2576_v44, %v451_v54  ;;  %v496_v26 = vmul.f32 %v2578_v45, %v452_v57  ;;  %v408_v0 = vmul.f32 0.00390625, %v387_v46  ;;  %v407_v1 = vmul.f32 0.00390625, %v384_v48 }
 0x134   : > { %v1800_v30 = vpop.eup %1799  ;;  %v457_v31 = vmul.f32 %v1798_v63, %v2481_v34  ;;  %v458_v2 = vmul.f32 %v1798_v63, %v2483_v35  ;;  %1807 = vrsqrt.f32 %v421_v62  ;;  %v393_v7 = vpop.xlane.xlu1 %392 }
 0x135   : > { %v390_v13 = vpop.xlane.xlu0 %389  ;;  %v523_v14 = vpack.c.bf16 %v497_v58, %v495_v25  ;;  %v524_v3 = vpack.c.bf16 %v498_v61, %v496_v26  ;;  %v455_v4 = vmul.f32 %v1800_v30, %v2490_v39  ;;  %v456_v16 = vmul.f32 %v1800_v30, %v2492_v40 }
 0x136   : > { %v501_v5 = vmul.f32 %v2576_v44, %v457_v31  ;;  %v502_v17 = vmul.f32 %v2578_v45, %v458_v2  ;;  %v424_v20 = vadd.f32 1e-05, %v408_v0  ;;  %v423_v21 = vadd.f32 1e-05, %v407_v1 }
 0x137   : > { %v1802_v22 = vpop.eup %1801  ;;  %539 = vst [vmem:[#allocation2 + $0x20] sm:$0xff] %v523_v14  ;;  %540 = vst [vmem:[#allocation2 + $0x28] sm:$0xff] %v524_v3  ;;  %v499_v34 = vmul.f32 %v2576_v44, %v455_v4  ;;  %v500_v35 = vmul.f32 %v2578_v45, %v456_v16  ;;  %v410_v23 = vmul.f32 0.00390625, %v393_v7  ;;  %v409_v24 = vmul.f32 0.00390625, %v390_v13 }
 0x138   : > { %v1804_v6 = vpop.eup %1803  ;;  %v461_v39 = vmul.f32 %v1802_v22, %v2503_v47  ;;  %v462_v40 = vmul.f32 %v1802_v22, %v2506_v50  ;;  %1809 = vrsqrt.f32 %v424_v20 }
 0x139   : > { %v525_v27 = vpack.c.bf16 %v501_v5, %v499_v34  ;;  %v526_v32 = vpack.c.bf16 %v502_v17, %v500_v35  ;;  %v459_v8 = vmul.f32 %v1804_v6, %v2508_v51  ;;  %v460_v9 = vmul.f32 %v1804_v6, %v2510_v52 }
 0x13a   : > { %v505_v33 = vmul.f32 %v2576_v44, %v461_v39  ;;  %v506_v38 = vmul.f32 %v2578_v45, %v462_v40  ;;  %1811 = vrsqrt.f32 %v423_v21  ;;  %v426_v41 = vadd.f32 1e-05, %v410_v23 }
 0x13b   : > { %541 = vst [vmem:[#allocation2 + $0x30] sm:$0xff] %v525_v27  ;;  %542 = vst [vmem:[#allocation2 + $0x38] sm:$0xff] %v526_v32  ;;  %v503_v10 = vmul.f32 %v2576_v44, %v459_v8  ;;  %v504_v47 = vmul.f32 %v2578_v45, %v460_v9  ;;  %v425_v50 = vadd.f32 1e-05, %v409_v24 }
 0x13c   : > { %v1806_v42 = vpop.eup %1805  ;;  %1813 = vrsqrt.f32 %v426_v41 }
 0x13d   : > { %v527_v11 = vpack.c.bf16 %v505_v33, %v503_v10  ;;  %v528_v43 = vpack.c.bf16 %v506_v38, %v504_v47  ;;  %v465_v51 = vmul.f32 %v1806_v42, %v2513_v55  ;;  %v466_v52 = vmul.f32 %v1806_v42, %v2515_v56 }
 0x13e   : > { %v1808_v46 = vpop.eup %1807  ;;  %1815 = vrsqrt.f32 %v425_v50 }
 0x13f   : > { %543 = vst [vmem:[#allocation2 + $0x40] sm:$0xff] %v527_v11  ;;  %544 = vst [vmem:[#allocation2 + $0x48] sm:$0xff] %v528_v43  ;;  %v509_v48 = vmul.f32 %v2576_v44, %v465_v51  ;;  %v510_v49 = vmul.f32 %v2578_v45, %v466_v52  ;;  %v463_v53 = vmul.f32 %v1808_v46, %v2519_v59 }
 0x140   : > { %v464_v54 = vmul.f32 %v1808_v46, %v2521_v60 }
 0x141   : > { %v507_v57 = vmul.f32 %v2576_v44, %v463_v53 }
 0x142   : > { %v508_v58 = vmul.f32 %v2578_v45, %v464_v54  ;;  %v1810_v61 = vpop.eup %1809 }
 0x143   : > { %v529_v55 = vpack.c.bf16 %v509_v48, %v507_v57  ;;  %v469_v56 = vmul.f32 %v1810_v61, %v2535_v12  ;;  %v470_v63 = vmul.f32 %v1810_v61, %v2541_v15 }
 0x144   : > { %v530_v62 = vpack.c.bf16 %v510_v49, %v508_v58  ;;  %v1812_v25 = vpop.eup %1811 }
 0x145   : > { %545 = vst [vmem:[#allocation2 + $0x50] sm:$0xff] %v529_v55  ;;  %v513_v26 = vmul.f32 %v2576_v44, %v469_v56  ;;  %v514_v59 = vmul.f32 %v2578_v45, %v470_v63  ;;  %v467_v60 = vmul.f32 %v1812_v25, %v2543_v18  ;;  %v468_v0 = vmul.f32 %v1812_v25, %v2545_v19 }
 0x146   : > { %546 = vst [vmem:[#allocation2 + $0x58] sm:$0xff] %v530_v62  ;;  %v1814_v1 = vpop.eup %1813 }
 0x147   : > { %v511_v30 = vmul.f32 %v2576_v44, %v467_v60  ;;  %v512_v31 = vmul.f32 %v2578_v45, %v468_v0  ;;  %v473_v12 = vmul.f32 %v1814_v1, %v2553_v28  ;;  %v474_v15 = vmul.f32 %v1814_v1, %v2555_v29 }
 0x148   : > { %v1816_v2 = vpop.eup %1815 }
 0x149   : > { %v531_v7 = vpack.c.bf16 %v513_v26, %v511_v30  ;;  %v532_v13 = vpack.c.bf16 %v514_v59, %v512_v31  ;;  %v517_v14 = vmul.f32 %v2576_v44, %v473_v12  ;;  %v518_v3 = vmul.f32 %v2578_v45, %v474_v15 }
 0x14a   : > { %v471_v18 = vmul.f32 %v1816_v2, %v2561_v36  ;;  %v472_v19 = vmul.f32 %v1816_v2, %v2563_v37 }
 0x14b   : > { %547 = vst [vmem:[#allocation2 + $0x60] sm:$0xff] %v531_v7  ;;  %548 = vst [vmem:[#allocation2 + $0x68] sm:$0xff] %v532_v13 }
 0x14c   : > { %v515_v4 = vmul.f32 %v2576_v44, %v471_v18  ;;  %v516_v16 = vmul.f32 %v2578_v45, %v472_v19 }
 0x14e   : > { %v533_v28 = vpack.c.bf16 %v517_v14, %v515_v4  ;;  %v534_v5 = vpack.c.bf16 %v518_v3, %v516_v16 }
 0x150   : > { %549 = vst [vmem:[#allocation2 + $0x70] sm:$0xff] %v533_v28  ;;  %550 = vst [vmem:[#allocation2 + $0x78] sm:$0xff] %v534_v5 }
 0x151 PF: > { %v1817_v29 = vld [vmem:[%s2417_s0 + $0x4] ss:$12 sps:$4 sm:$0xff]   ;;  %v1819_v36 = vld [vmem:[%s2417_s0] ss:$12 sps:$4 sm:$0xff]   ;;  %v1820_v37 = vld [vmem:[%s2417_s0 + $0x1c] ss:$12 sps:$4 sm:$0xff]  }
 0x152   : > { %887 = vmatprep.subr.bf16.mxu0 %v1817_v29  ;;  %v1822_v44 = vld [vmem:[%s2417_s0 + $0x18] ss:$12 sps:$4 sm:$0xff]   ;;  %v1823_v45 = vld [vmem:[%s2417_s0 + $0x34] ss:$12 sps:$4 sm:$0xff]   ;;  %v1825_v17 = vld [vmem:[%s2417_s0 + $0x30] ss:$12 sps:$4 sm:$0xff]  }
 0x153   : > { %888 = vmatpush1.bf16.msra.mxu0 %v1819_v36  ;;  %v1826_v20 = vld [vmem:[%s2417_s0 + $0x4c] ss:$12 sps:$4 sm:$0xff]   ;;  %v1838_v21 = vld [vmem:[%s2417_s0 + $0xc8] ss:$12 sps:$4 sm:$0xff]   ;;  %v1829_v34 = vld [vmem:[%s2417_s0 + $0x64] ss:$12 sps:$4 sm:$0xff]  }
 0x154   : > { %889 = vmatprep.subr.bf16.mxu0 %v1820_v37  ;;  %v1828_v22 = vld [vmem:[%s2417_s0 + $0x48] ss:$12 sps:$4 sm:$0xff]   ;;  %1561 = vmatprep.subr.bf16.mxu1 %v1838_v21  ;;  %v1843_v23 = vld [vmem:[%s2417_s0 + $0xe0] ss:$12 sps:$4 sm:$0xff]   ;;  %v1848_v40 = vld [vmem:[%s2417_s0 + $0xf8] ss:$12 sps:$4 sm:$0xff]  }
 0x155   : > { %v1841_v35 = vld [vmem:[%s2417_s0 + $0x8] ss:$12 sps:$4 sm:$0xff]   ;;  %v1831_v24 = vld [vmem:[%s2417_s0 + $0x60] ss:$12 sps:$4 sm:$0xff]   ;;  %v1834_v27 = vld [vmem:[%s2417_s0 + $0x78] ss:$12 sps:$4 sm:$0xff]  }
 0x156   : > { %1562 = vmatpush3.bf16.msra.mxu1 %v1841_v35  ;;  %v1832_v6 = vld [vmem:[%s2417_s0 + $0x7c] ss:$12 sps:$4 sm:$0xff]   ;;  %v1846_v39 = vld [vmem:[%s2417_s0 + $0x20] ss:$12 sps:$4 sm:$0xff]   ;;  %v1851_v32 = vld [vmem:[%s2417_s0 + $0x38] ss:$12 sps:$4 sm:$0xff]  }
 0x157   : > { %890 = vmatpush1.bf16.msra.mxu0 %v1822_v44  ;;  %1563 = vmatprep.subr.bf16.mxu1 %v1843_v23  ;;  %v1835_v8 = vld [vmem:[%s2417_s0 + $0x94] ss:$12 sps:$4 sm:$0xff]   ;;  %v1853_v9 = vld [vmem:[%s2417_s0 + $0x110] ss:$12 sps:$4 sm:$0xff]   ;;  %v1839_v10 = vld [vmem:[%s2417_s0 + $0xac] ss:$12 sps:$4 sm:$0xff]  }
 0x158   : > { %891 = vmatprep.subr.bf16.mxu0 %v1823_v45  ;;  %v1837_v33 = vld [vmem:[%s2417_s0 + $0x90] ss:$12 sps:$4 sm:$0xff]   ;;  %v1858_v41 = vld [vmem:[%s2417_s0 + $0x128] ss:$12 sps:$4 sm:$0xff]   ;;  %v1863_v42 = vld [vmem:[%s2417_s0 + $0x140] ss:$12 sps:$4 sm:$0xff]  }
 0x159   : > { %v1856_v38 = vld [vmem:[%s2417_s0 + $0x50] ss:$12 sps:$4 sm:$0xff]   ;;  %v1842_v47 = vld [vmem:[%s2417_s0 + $0xa8] ss:$12 sps:$4 sm:$0xff]   ;;  %v1847_v43 = vld [vmem:[%s2417_s0 + $0xc0] ss:$12 sps:$4 sm:$0xff]  }
 0x15a   : > { %1564 = vmatpush3.bf16.msra.mxu1 %v1846_v39  ;;  %v1861_v50 = vld [vmem:[%s2417_s0 + $0x68] ss:$12 sps:$4 sm:$0xff]   ;;  %v1844_v11 = vld [vmem:[%s2417_s0 + $0xc4] ss:$12 sps:$4 sm:$0xff]   ;;  %v1866_v51 = vld [vmem:[%s2417_s0 + $0x80] ss:$12 sps:$4 sm:$0xff]  }
 0x15b   : > { %892 = vmatpush1.bf16.msra.mxu0 %v1825_v17  ;;  %1565 = vmatprep.subr.bf16.mxu1 %v1848_v40  ;;  %v1868_v52 = vld [vmem:[%s2417_s0 + $0x158] ss:$12 sps:$4 sm:$0xff]   ;;  %v1849_v46 = vld [vmem:[%s2417_s0 + $0xdc] ss:$12 sps:$4 sm:$0xff]   ;;  %v1854_v54 = vld [vmem:[%s2417_s0 + $0xf4] ss:$12 sps:$4 sm:$0xff]  }
 0x15c   : > { %893 = vmatprep.subr.bf16.mxu0 %v1826_v20  ;;  %v1871_v48 = vld [vmem:[%s2417_s0 + $0x98] ss:$12 sps:$4 sm:$0xff]   ;;  %v1873_v53 = vld [vmem:[%s2417_s0 + $0x170] ss:$12 sps:$4 sm:$0xff]   ;;  %v552_v57 = vld [vmem:[#allocation2 + $0x8] sm:$0xff]  ;;  %s2869_s1 = sld [smem:[#allocation13_spill]] }
 0x15d   : > { %v1852_v49 = vld [vmem:[%s2417_s0 + $0xd8] ss:$12 sps:$4 sm:$0xff]   ;;  %1032 = vmatprep.mubr.bf16.mxu1 %v552_v57  ;;  %919 = vmatprep.mubr.bf16.mxu0 %v552_v57  ;;  %v1876_v58 = vld [vmem:[%s2417_s0 + $0xb0] ss:$12 sps:$4 sm:$0xff]   ;;  %v1862_v56 = vld [vmem:[%s2417_s0 + $0x108] ss:$12 sps:$4 sm:$0xff]  }
 0x15e   : > { %1566 = vmatpush3.bf16.msra.mxu1 %v1851_v32  ;;  %v1857_v61 = vld [vmem:[%s2417_s0 + $0xf0] ss:$12 sps:$4 sm:$0xff]   ;;  %v1859_v55 = vld [vmem:[%s2417_s0 + $0x10c] ss:$12 sps:$4 sm:$0xff]   ;;  %v551_v62 = vld [vmem:[#allocation2] sm:$0xff]  ;;  %s2870_s30 = sld [smem:[#allocation14_spill]] }
 0x15f   : > { %894 = vmatpush1.bf16.msra.mxu0 %v1828_v22  ;;  %1567 = vmatprep.subr.bf16.mxu1 %v1853_v9  ;;  %v554_v63 = vld [vmem:[#allocation2 + $0x18] sm:$0xff]  ;;  %v1864_v25 = vld [vmem:[%s2417_s0 + $0x124] ss:$12 sps:$4 sm:$0xff]   ;;  %v1867_v26 = vld [vmem:[%s2417_s0 + $0x120] ss:$12 sps:$4 sm:$0xff]   ;;  %s2871_s12 = sld [smem:[#allocation15_spill]] }
 0x160   : > { %895 = vmatprep.subr.bf16.mxu0 %v1829_v34  ;;  %v1869_v59 = vld [vmem:[%s2417_s0 + $0x13c] ss:$12 sps:$4 sm:$0xff]   ;;  %v553_v60 = vld [vmem:[#allocation2 + $0x10] sm:$0xff]  ;;  %v1872_v0 = vld [vmem:[%s2417_s0 + $0x138] ss:$12 sps:$4 sm:$0xff]   ;;  %s2872_s21 = sld [smem:[#allocation19_spill]] }
 0x161   : > { %v556_v1 = vld [vmem:[#allocation2 + $0x28] sm:$0xff]  ;;  %v1874_v30 = vld [vmem:[%s2417_s0 + $0x154] ss:$12 sps:$4 sm:$0xff]   ;;  %v1877_v31 = vld [vmem:[%s2417_s0 + $0x150] ss:$12 sps:$4 sm:$0xff]   ;;  %s1308_s25 = sshll.u32 %s2426_s18, 4  ;;  %s2731_s25 = int_to_ptr.vmem [resolvable:$true] %s1308_s25 }
 0x162   : > { %1568 = vmatpush3.bf16.msra.mxu1 %v1856_v38  ;;  %v1878_v12 = vld [vmem:[%s2417_s0 + $0x16c] ss:$12 sps:$4 sm:$0xff]   ;;  %v555_v15 = vld [vmem:[#allocation2 + $0x20] sm:$0xff]  ;;  %v1880_v2 = vld [vmem:[%s2417_s0 + $0x168] ss:$12 sps:$4 sm:$0xff]   ;;  %s1298_s28 = smul.u32 3, %s2869_s1 }
 0x163   : > { %896 = vmatpush1.bf16.msra.mxu0 %v1831_v24  ;;  %1569 = vmatprep.subr.bf16.mxu1 %v1858_v41  ;;  %v558_v7 = vld [vmem:[#allocation2 + $0x38] sm:$0xff]  ;;  %v557_v13 = vld [vmem:[#allocation2 + $0x30] sm:$0xff]  ;;  %v560_v14 = vld [vmem:[#allocation2 + $0x48] sm:$0xff]  ;;  %s2873_s22 = sld [smem:[#allocation23_spill]] }
 0x164   : > { %897 = vmatprep.subr.bf16.mxu0 %v1832_v6  ;;  %v559_v3 = vld [vmem:[#allocation2 + $0x40] sm:$0xff]  ;;  %v562_v18 = vld [vmem:[#allocation2 + $0x58] sm:$0xff]  ;;  %v561_v19 = vld [vmem:[#allocation2 + $0x50] sm:$0xff]  ;;  %s1628_s4 = smul.u32 96, %s2870_s30  ;;  %s2737_s30 = scalar_lea.sflag [#allocation5], %s254_s23 }
 0x165   : > { %v564_v4 = vld [vmem:[#allocation2 + $0x68] sm:$0xff]  ;;  %v563_v16 = vld [vmem:[#allocation2 + $0x60] sm:$0xff]  ;;  %v566_v28 = vld [vmem:[#allocation2 + $0x78] sm:$0xff]  ;;  %s1629_s6 = smul.u32 192, %s2871_s12  ;;  %s1941_s12 = scalar_lea.vmem %s2731_s25, 3072 }
 0x166   : > { %1570 = vmatpush3.bf16.msra.mxu1 %v1861_v50  ;;  %v565_v5 = vld [vmem:[#allocation2 + $0x70] sm:$0xff]  ;;  %s1303_s29 = sadd.s32 %s1628_s4, %s1298_s28  ;;  %p1942_p10 = scmp.ne.s32.totalorder %s2731_s25, %s1941_s12 }
 0x167   : > { %898 = vmatpush1.bf16.msra.mxu0 %v1834_v27  ;;  %1571 = vmatprep.subr.bf16.mxu1 %v1863_v42  ;;  %s1305_s3 = sadd.s32 %s1629_s6, %s1303_s29  ;;  %p2875_p11 = scmp.ne.s32.totalorder %s2872_s21, 0 }
 0x168   : > { %899 = vmatprep.subr.bf16.mxu0 %v1835_v8  ;;  %s1524_s0 = sshll.u32 %s1305_s3, 6  ;;  %s2116_s28 = smov [#allocation8]  }
 0x169   : > { %s2874_s10 = smov %s2873_s22  ;;  %s2729_s1 = scalar_lea.hbm %s2873_s22, %s1524_s0 }
 0x16a   : > { %1572 = vmatpush3.bf16.msra.mxu1 %v1866_v51  ;;  %p1943_p0 = pnand %p1942_p10, %p2875_p11  ;;  %s1945_s4 = sshll.u32 %s2116_s28, 4  ;;  %s1946_s4 = int_to_ptr.vmem [resolvable:$false] %s1945_s4 }
 0x16b   : > { %900 = vmatpush1.bf16.msra.mxu0 %v1837_v33  ;;  %1573 = vmatprep.subr.bf16.mxu1 %v1868_v52  ;;  %s1947_s6 = scalar_lea.vmem %s1946_s4, 6144  ;;  %p1948_p12 = scmp.lt.s32.totalorder %s2731_s25, %s1946_s4 }
 0x16c   : > { %901 = vmatprep.subr.bf16.mxu0 %v1839_v10  ;;  %p1944_p3 = pneg %p1943_p0  ;;  %p1949_p9 = scmp.lt.s32.totalorder %s1947_s6, %s1941_s12 }
 0x16e   : > { %1574 = vmatpush3.bf16.msra.mxu1 %v1871_v48  ;;  %p1950_p4 = por %p1949_p9, %p1948_p12 }
 0x16f   : > { %902 = vmatpush1.bf16.msra.mxu0 %v1842_v47  ;;  %1575 = vmatprep.subr.bf16.mxu1 %v1873_v53 }
 0x170   : > { %903 = vmatprep.subr.bf16.mxu0 %v1844_v11  ;;  %p1951_p2 = pnand %p1950_p4, %p1944_p3 }
 0x172   : > { %1576 = vmatpush3.bf16.msra.mxu1 %v1876_v58 }
 0x173   : > { %904 = vmatpush1.bf16.msra.mxu0 %v1847_v43 }
 0x174   : > { %905 = vmatprep.subr.bf16.mxu0 %v1849_v46 }
 0x175   : > { %1033 = vmatmul.mubr.bf16.vlgmr.msra.gmra.mrb[0].mxu1 %v551_v62 }
 0x176   : > { %1040 = vmatprep.mubr.bf16.mxu1 %v554_v63 }
 0x177   : > { %906 = vmatpush1.bf16.msra.mxu0 %v1852_v49 }
 0x178   : > { %907 = vmatprep.subr.bf16.mxu0 %v1854_v54 }
 0x17b   : > { %908 = vmatpush1.bf16.msra.mxu0 %v1857_v61 }
 0x17c   : > { %909 = vmatprep.subr.bf16.mxu0 %v1859_v55 }
 0x17d   : > { %1041 = vmatmul.mubr.bf16.gmra.mrb[4].mxu1 %v553_v60 }
 0x17e   : > { %1048 = vmatprep.mubr.bf16.mxu1 %v556_v1 }
 0x17f   : > { %910 = vmatpush1.bf16.msra.mxu0 %v1862_v56 }
 0x180   : > { %911 = vmatprep.subr.bf16.mxu0 %v1864_v25 }
 0x183   : > { %912 = vmatpush1.bf16.msra.mxu0 %v1867_v26 }
 0x184   : > { %913 = vmatprep.subr.bf16.mxu0 %v1869_v59 }
 0x185   : > { %1049 = vmatmul.mubr.bf16.gmra.mrb[8].mxu1 %v555_v15 }
 0x186   : > { %1056 = vmatprep.mubr.bf16.mxu1 %v558_v7 }
 0x187   : > { %914 = vmatpush1.bf16.msra.mxu0 %v1872_v0 }
 0x188   : > { %915 = vmatprep.subr.bf16.mxu0 %v1874_v30 }
 0x18b   : > { %916 = vmatpush1.bf16.msra.mxu0 %v1877_v31 }
 0x18c   : > { %917 = vmatprep.subr.bf16.mxu0 %v1878_v12 }
 0x18d   : > { %1057 = vmatmul.mubr.bf16.gmra.mrb[12].mxu1 %v557_v13 }
 0x18e   : > { %1064 = vmatprep.mubr.bf16.mxu1 %v560_v14 }
 0x18f   : > { %918 = vmatpush1.bf16.msra.mxu0 %v1880_v2 }
 0x192   : > { %920 = vmatmul.mubr.bf16.vlgmr.msra.gmra.mrb[0].mxu0 %v551_v62 }
 0x193   : > { %929 = vmatprep.mubr.bf16.mxu0 %v554_v63 }
 0x195   : > { %1065 = vmatmul.mubr.bf16.gmra.mrb[16].mxu1 %v559_v3 }
 0x196   : > { %1072 = vmatprep.mubr.bf16.mxu1 %v562_v18 }
 0x19a   : > { %930 = vmatmul.mubr.bf16.gmra.mrb[4].mxu0 %v553_v60 }
 0x19b   : > { %939 = vmatprep.mubr.bf16.mxu0 %v556_v1 }
 0x19d   : > { %1073 = vmatmul.mubr.bf16.gmra.mrb[20].mxu1 %v561_v19 }
 0x19e   : > { %1080 = vmatprep.mubr.bf16.mxu1 %v564_v4 }
 0x1a2   : > { %940 = vmatmul.mubr.bf16.gmra.mrb[8].mxu0 %v555_v15 }
 0x1a3   : > { %949 = vmatprep.mubr.bf16.mxu0 %v558_v7 }
 0x1a5   : > { %1081 = vmatmul.mubr.bf16.gmra.mrb[24].mxu1 %v563_v16 }
 0x1a6   : > { %1088 = vmatprep.mubr.bf16.mxu1 %v566_v28 }
 0x1aa   : > { %950 = vmatmul.mubr.bf16.gmra.mrb[12].mxu0 %v557_v13 }
 0x1ab   : > { %959 = vmatprep.mubr.bf16.mxu0 %v560_v14 }
 0x1ad   : > { %1089 = vmatmul.mubr.bf16.gmra.mrb[28].mxu1 %v565_v5 }
 0x1b2   : > { %960 = vmatmul.mubr.bf16.gmra.mrb[16].mxu0 %v559_v3 }
 0x1b3   : > { %969 = vmatprep.mubr.bf16.mxu0 %v562_v18 }
 0x1ba   : > { %970 = vmatmul.mubr.bf16.gmra.mrb[20].mxu0 %v561_v19 }
 0x1bb   : > { %979 = vmatprep.mubr.bf16.mxu0 %v564_v4 }
 0x1c2   : > { %980 = vmatmul.mubr.bf16.gmra.mrb[24].mxu0 %v563_v16 }
 0x1c3   : > { %989 = vmatprep.mubr.bf16.mxu0 %v566_v28 }
 0x1ca   : > { %990 = vmatmul.mubr.bf16.gmra.mrb[28].mxu0 %v565_v5 }
 0x248   : > { %v1577_v29 = vpop.f32.mrb[0].mxu1 }
 0x249   : > { %v1578_v36 = vpop.f32.mrb[1].mxu1 }
 0x24a   : > { %v1579_v37 = vadd.f32 %v1578_v36, %v1577_v29  ;;  %v1580_v44 = vpop.f32.mrb[2].mxu1 }
 0x24b   : > { %v1581_v45 = vpop.f32.mrb[3].mxu1 }
 0x24c   : > { %v1530_v17 = vpack.c.bf16 %v1579_v37, %v1579_v37  ;;  %v1582_v20 = vadd.f32 %v1581_v45, %v1580_v44 }
 0x24e   : > { %1258 = vst [vmem:[%s2426_s18 + $0x8] sm:$0xf] %v1530_v17  ;;  %v1532_v21 = vpack.c.bf16 %v1582_v20, %v1582_v20 }
 0x250   : > { %1260 = vst [vmem:[%s2426_s18 + $0x14] sm:$0xf] %v1532_v21  ;;  %v1583_v22 = vpop.f32.mrb[4].mxu1 }
 0x251   : > { %v1584_v34 = vpop.f32.mrb[5].mxu1 }
 0x252   : > { %v1585_v35 = vadd.f32 %v1584_v34, %v1583_v22  ;;  %v1586_v23 = vpop.f32.mrb[6].mxu1 }
 0x253   : > { %v1587_v24 = vpop.f32.mrb[7].mxu1 }
 0x254   : > { %v1534_v6 = vpack.c.bf16 %v1585_v35, %v1585_v35  ;;  %v1588_v39 = vadd.f32 %v1587_v24, %v1586_v23 }
 0x256   : > { %1262 = vst [vmem:[%s2426_s18 + $0x20] sm:$0xf] %v1534_v6  ;;  %v1536_v40 = vpack.c.bf16 %v1588_v39, %v1588_v39 }
 0x258   : > { %1264 = vst [vmem:[%s2426_s18 + $0x2c] sm:$0xf] %v1536_v40  ;;  %v1589_v27 = vpop.f32.mrb[8].mxu1 }
 0x259   : > { %v1590_v32 = vpop.f32.mrb[9].mxu1 }
 0x25a   : > { %v1591_v8 = vadd.f32 %v1590_v32, %v1589_v27  ;;  %v1592_v9 = vpop.f32.mrb[10].mxu1 }
 0x25b   : > { %v1593_v33 = vpop.f32.mrb[11].mxu1 }
 0x25c   : > { %v1538_v38 = vpack.c.bf16 %v1591_v8, %v1591_v8  ;;  %v1594_v41 = vadd.f32 %v1593_v33, %v1592_v9 }
 0x25e   : > { %1266 = vst [vmem:[%s2426_s18 + $0x38] sm:$0xf] %v1538_v38  ;;  %v1540_v50 = vpack.c.bf16 %v1594_v41, %v1594_v41 }
 0x260   : > { %1268 = vst [vmem:[%s2426_s18 + $0x44] sm:$0xf] %v1540_v50  ;;  %v1595_v51 = vpop.f32.mrb[12].mxu1 }
 0x261   : > { %v1596_v46 = vpop.f32.mrb[13].mxu1 }
 0x262   : > { %v1597_v48 = vadd.f32 %v1596_v46, %v1595_v51  ;;  %v1598_v49 = vpop.f32.mrb[14].mxu1 }
 0x263   : > { %v1599_v53 = vpop.f32.mrb[15].mxu1 }
 0x264   : > { %v1542_v54 = vpack.c.bf16 %v1597_v48, %v1597_v48  ;;  %v1600_v57 = vadd.f32 %v1599_v53, %v1598_v49 }
 0x265   : > { %v921_v10 = vpop.f32.mrb[0].mxu0 }
 0x266   : > { %v923_v47 = vpop.f32.mrb[1].mxu0  ;;  %1270 = vst [vmem:[%s2426_s18 + $0x50] sm:$0xf] %v1542_v54  ;;  %v1544_v55 = vpack.c.bf16 %v1600_v57, %v1600_v57 }
 0x267   : > { %v1529_v42 = vpack.c.bf16 %v923_v47, %v921_v10  ;;  %v925_v11 = vpop.f32.mrb[2].mxu0 }
 0x268   : > { %v927_v43 = vpop.f32.mrb[3].mxu0  ;;  %1272 = vst [vmem:[%s2426_s18 + $0x5c] sm:$0xf] %v1544_v55  ;;  %v1601_v25 = vpop.f32.mrb[16].mxu1 }
 0x269   : > { %1257 = vst [vmem:[%s2426_s18] sm:$0xff] %v1529_v42  ;;  %v1531_v52 = vpack.c.bf16 %v927_v43, %v925_v11  ;;  %v1602_v59 = vpop.f32.mrb[17].mxu1 }
 0x26a   : > { %v1603_v60 = vadd.f32 %v1602_v59, %v1601_v25  ;;  %v1604_v0 = vpop.f32.mrb[18].mxu1 }
 0x26b   : > { %1259 = vst [vmem:[%s2426_s18 + $0xc] sm:$0xff] %v1531_v52  ;;  %v1605_v1 = vpop.f32.mrb[19].mxu1 }
 0x26c   : > { %v1546_v30 = vpack.c.bf16 %v1603_v60, %v1603_v60  ;;  %v1606_v31 = vadd.f32 %v1605_v1, %v1604_v0 }
 0x26d   : > { %v931_v58 = vpop.f32.mrb[4].mxu0 }
 0x26e   : > { %v933_v61 = vpop.f32.mrb[5].mxu0  ;;  %1274 = vst [vmem:[%s2426_s18 + $0x68] sm:$0xf] %v1546_v30  ;;  %v1548_v2 = vpack.c.bf16 %v1606_v31, %v1606_v31 }
 0x26f   : > { %v1533_v62 = vpack.c.bf16 %v933_v61, %v931_v58  ;;  %v935_v56 = vpop.f32.mrb[6].mxu0 }
 0x270   : > { %v937_v63 = vpop.f32.mrb[7].mxu0  ;;  %1276 = vst [vmem:[%s2426_s18 + $0x74] sm:$0xf] %v1548_v2  ;;  %v1607_v3 = vpop.f32.mrb[20].mxu1 }
 0x271   : > { %1261 = vst [vmem:[%s2426_s18 + $0x18] sm:$0xff] %v1533_v62  ;;  %v1535_v26 = vpack.c.bf16 %v937_v63, %v935_v56  ;;  %v1608_v19 = vpop.f32.mrb[21].mxu1 }
 0x272   : > { %v1609_v4 = vadd.f32 %v1608_v19, %v1607_v3  ;;  %v1610_v16 = vpop.f32.mrb[22].mxu1 }
 0x273   : > { %1263 = vst [vmem:[%s2426_s18 + $0x24] sm:$0xff] %v1535_v26  ;;  %v1611_v28 = vpop.f32.mrb[23].mxu1 }
 0x274   : > { %v1550_v5 = vpack.c.bf16 %v1609_v4, %v1609_v4  ;;  %v1612_v29 = vadd.f32 %v1611_v28, %v1610_v16 }
 0x275   : > { %v941_v12 = vpop.f32.mrb[8].mxu0 }
 0x276   : > { %v943_v15 = vpop.f32.mrb[9].mxu0  ;;  %1278 = vst [vmem:[%s2426_s18 + $0x80] sm:$0xf] %v1550_v5  ;;  %v1552_v44 = vpack.c.bf16 %v1612_v29, %v1612_v29 }
 0x277   : > { %v1537_v7 = vpack.c.bf16 %v943_v15, %v941_v12  ;;  %v945_v13 = vpop.f32.mrb[10].mxu0 }
 0x278   : > { %v947_v14 = vpop.f32.mrb[11].mxu0  ;;  %1280 = vst [vmem:[%s2426_s18 + $0x8c] sm:$0xf] %v1552_v44  ;;  %v1613_v21 = vpop.f32.mrb[24].mxu1 }
 0x279   : > { %1265 = vst [vmem:[%s2426_s18 + $0x30] sm:$0xff] %v1537_v7  ;;  %v1539_v18 = vpack.c.bf16 %v947_v14, %v945_v13  ;;  %v1614_v34 = vpop.f32.mrb[25].mxu1 }
 0x27a   : > { %v1615_v35 = vadd.f32 %v1614_v34, %v1613_v21  ;;  %v1616_v23 = vpop.f32.mrb[26].mxu1 }
 0x27b   : > { %1267 = vst [vmem:[%s2426_s18 + $0x3c] sm:$0xff] %v1539_v18  ;;  %v1617_v24 = vpop.f32.mrb[27].mxu1 }
 0x27c   : > { %v1554_v6 = vpack.c.bf16 %v1615_v35, %v1615_v35  ;;  %v1618_v39 = vadd.f32 %v1617_v24, %v1616_v23 }
 0x27d   : > { %v951_v36 = vpop.f32.mrb[12].mxu0 }
 0x27e   : > { %v953_v37 = vpop.f32.mrb[13].mxu0  ;;  %1282 = vst [vmem:[%s2426_s18 + $0x98] sm:$0xf] %v1554_v6  ;;  %v1556_v32 = vpack.c.bf16 %v1618_v39, %v1618_v39 }
 0x27f   : > { %v1541_v45 = vpack.c.bf16 %v953_v37, %v951_v36  ;;  %v955_v17 = vpop.f32.mrb[14].mxu0 }
 0x280   : > { %v957_v20 = vpop.f32.mrb[15].mxu0  ;;  %1284 = vst [vmem:[%s2426_s18 + $0xa4] sm:$0xf] %v1556_v32  ;;  %v1619_v38 = vpop.f32.mrb[28].mxu1 }
 0x281   : > { %1269 = vst [vmem:[%s2426_s18 + $0x48] sm:$0xff] %v1541_v45  ;;  %v1543_v22 = vpack.c.bf16 %v957_v20, %v955_v17  ;;  %v1620_v10 = vpop.f32.mrb[29].mxu1 }
 0x282   : > { %v1621_v47 = vadd.f32 %v1620_v10, %v1619_v38  ;;  %v1622_v50 = vpop.f32.mrb[30].mxu1 }
 0x283   : > { %1271 = vst [vmem:[%s2426_s18 + $0x54] sm:$0xff] %v1543_v22  ;;  %v1623_v42 = vpop.f32.mrb[31].mxu1 }
 0x284   : > { %v1558_v11 = vpack.c.bf16 %v1621_v47, %v1621_v47  ;;  %v1624_v43 = vadd.f32 %v1623_v42, %v1622_v50 }
 0x285   : > { %v961_v40 = vpop.f32.mrb[16].mxu0 }
 0x286   : > { %v963_v27 = vpop.f32.mrb[17].mxu0  ;;  %1286 = vst [vmem:[%s2426_s18 + $0xb0] sm:$0xf] %v1558_v11  ;;  %v1560_v46 = vpack.c.bf16 %v1624_v43, %v1624_v43 }
 0x287   : > { %v1545_v8 = vpack.c.bf16 %v963_v27, %v961_v40  ;;  %v965_v9 = vpop.f32.mrb[18].mxu0 }
 0x288   : > { %v967_v33 = vpop.f32.mrb[19].mxu0  ;;  %1288 = vst [vmem:[%s2426_s18 + $0xbc] sm:$0xf] %v1560_v46 }
 0x289   : > { %1273 = vst [vmem:[%s2426_s18 + $0x60] sm:$0xff] %v1545_v8  ;;  %v1547_v41 = vpack.c.bf16 %v967_v33, %v965_v9 }
 0x28b   : > { %1275 = vst [vmem:[%s2426_s18 + $0x6c] sm:$0xff] %v1547_v41 }
 0x28d   : > { %v971_v51 = vpop.f32.mrb[20].mxu0 }
 0x28e   : > { %v973_v52 = vpop.f32.mrb[21].mxu0 }
 0x28f   : > { %v1549_v48 = vpack.c.bf16 %v973_v52, %v971_v51  ;;  %v975_v49 = vpop.f32.mrb[22].mxu0 }
 0x290   : > { %v977_v53 = vpop.f32.mrb[23].mxu0 }
 0x291   : > { %1277 = vst [vmem:[%s2426_s18 + $0x78] sm:$0xff] %v1549_v48  ;;  %v1551_v54 = vpack.c.bf16 %v977_v53, %v975_v49 }
 0x293   : > { %1279 = vst [vmem:[%s2426_s18 + $0x84] sm:$0xff] %v1551_v54 }
 0x295   : > { %v981_v57 = vpop.f32.mrb[24].mxu0 }
 0x296   : > { %v983_v58 = vpop.f32.mrb[25].mxu0 }
 0x297   : > { %v1553_v61 = vpack.c.bf16 %v983_v58, %v981_v57  ;;  %v985_v55 = vpop.f32.mrb[26].mxu0 }
 0x298   : > { %v987_v62 = vpop.f32.mrb[27].mxu0 }
 0x299   : > { %1281 = vst [vmem:[%s2426_s18 + $0x90] sm:$0xff] %v1553_v61  ;;  %v1555_v56 = vpack.c.bf16 %v987_v62, %v985_v55 }
 0x29b   : > { %1283 = vst [vmem:[%s2426_s18 + $0x9c] sm:$0xff] %v1555_v56 }
 0x29d   : > { %v991_v63 = vpop.f32.mrb[28].mxu0 }
 0x29e   : > { %v993_v25 = vpop.f32.mrb[29].mxu0 }
 0x29f   : > { %v1557_v26 = vpack.c.bf16 %v993_v25, %v991_v63  ;;  %v995_v59 = vpop.f32.mrb[30].mxu0 }
 0x2a0   : > { %v997_v60 = vpop.f32.mrb[31].mxu0 }
 0x2a1   : > { %1285 = vst [vmem:[%s2426_s18 + $0xa8] sm:$0xff] %v1557_v26  ;;  %v1559_v0 = vpack.c.bf16 %v997_v60, %v995_v59 }
 0x2a3   : > { %1287 = vst [vmem:[%s2426_s18 + $0xb4] sm:$0xff] %v1559_v0 }
 0x2a4   : > { %1954 = shalt.err (!%p1951_p2)
}
 0x2a5   : > { %s1955_s23 = scalar_lea.hbm %s2729_s1, 3072  ;;  %s1959_s3 = scalar_lea.hbm %s2874_s10, 24576 }
 0x2a6   : > { %p1956_p5 = scmp.ne.s32.totalorder %s2729_s1, %s1955_s23  ;;  %p1960_p13 = scmp.lt.u32.totalorder %s2729_s1, %s2874_s10 }
 0x2a7   : > { %p1961_p6 = scmp.lt.u32.totalorder %s1959_s3, %s1955_s23  ;;  %p1963_p10 = scmp.lt.u32.totalorder %s1955_s23, %s2729_s1 }
 0x2a8   : > { %p1957_p7 = pnand %p1956_p5, %p2875_p11 }
 0x2a9   : > { %p1962_p1 = por %p1961_p6, %p1960_p13 }
 0x2aa   : > { %p1958_p8 = pneg %p1957_p7 }
 0x2ab   : > { %p1964_p0 = por %p1963_p10, %p1962_p1 }
 0x2ad   : > { %p1965_p3 = pnand %p1964_p0, %p1958_p8 }
 0x2af   : > { %1968 = shalt.err (!%p1965_p3)
}
 0x2b0   : > { %s2117_s15 = smov 192   ;;  %s2118_s22 = smov 384  }
 0x2b1   : > { %s2119_s12 = smov 12  }
 0x2b2   : > { %1634 = dma.vmem_to_hbm [thread:$0]  (%p2875_p11), %s2731_s25, 3072, %s2729_s1, %s2737_s30, %s2117_s15, %s2118_s22, %s2119_s12  }
 0x2b3 PF: > { %s2876_s28 = sld [smem:[#allocation12_spill]]  ;;  %p1648_p12 = scmp.ge.s32.totalorder %s2107_s27, 2 }
 0x2b4   : > { %p2877_p9 = scmp.ne.s32.totalorder %s2861_s7, 0 }
 0x2b6   : > { %p1644_p4 = pnand %p1648_p12, %p2877_p9 }
 0x2b9   : > { %s1323_s4 = sand.u32 1, %s2876_s28  }
 0x2ba   : > { %s1324_s6 = scalar_lea.sflag [#allocation5], %s1323_s4 }
 0x2bb   : > { %2042 = dma.done.wait (!%p1644_p4), %s1324_s6, 3072  }
 0x2bc   : > { %2044 = vsyncadd (!%p1644_p4), %s1324_s6, 4294964224  ;;  %s22_s27 = sadd.s32 1, %s2107_s27   ;;  %s2879_s21 = sld [smem:[#allocation20_spill]] }
 0x2bd   : > { %p2766_p2 = scmp.ge.s32.totalorder %s22_s27, 10   ;;  %s2880_s22 = sld [smem:[#allocation16_spill]] }
 0x2be   : > { %s2881_s7 = sld [smem:[#allocation17_spill]]  ;;  %s2882_s25 = sld [smem:[#allocation18_spill]] }
 0x2bf   : > { %s2883_s12 = smov %s2051_s13  ;;  %s2885_s13 = smov %s2055_s14 }
 0x2c0   : > { %s2886_s14 = smov %s2361_s5  ;;  %s2887_s15 = smov %s2063_s16 }
 0x2c1   : > { %s2888_s16 = smov %s2067_s17  ;;  %s2890_s18 = smov %s2075_s19 }
 0x2c2   : > { %s2889_s17 = smov %s2879_s21  ;;  %s2891_s19 = smov %s2079_s20 }
 0x2c3   : > { %s2892_s20 = smov %s2358_s9  ;;  %s2893_s21 = smov %s2095_s24 }
 0x2c4   : > { %s2894_s23 = smov %s2103_s26  ;;  %s2895_s24 = smov %s2881_s7 }
 0x2c5   : > { %s2896_s26 = smov %s2906_s11  ;;  %21 = sbr.rel (!%p2766_p2) target bundleno = 17 (0x11), region = 94 }
 0x2cc   :  { %1329 = vsyncpa [#allocation4], 1 }
 0x2cd   :  { %1331 = vsyncpa [#allocation4 + $0x1], 1 }
 0x2ce   :  { %1332 = vsyncpa [#allocation7], 1 }
 0x2cf   :  { %1334 = vsyncpa [#allocation7 + $0x1], 1 }
 0x2d0   :  { %1335 = vsyncpa [#allocation5], 1 }
 0x2d1   :  { %1337 = vsyncpa [#allocation5 + $0x1], 1 }

</bundles_post_ra>
